<compile_context>
chip_gen: v6e
topology: v6e:2x2x1
jax: 0.10.0
libtpu: 0.0.40
codegen_flags: <defaults>
</compile_context>

<pallas_src>
import functools

import jax
import jax.numpy as jnp
from jax.experimental import pallas as pl
from jax.experimental.pallas import tpu as pltpu

_BN_EPS = 1e-5
_LANE = 128  # channel axes are zero-padded to this lane width inside the wrapper


# --------------------------------------------------------------------------------------
# Kernel
# --------------------------------------------------------------------------------------
def _convt3(h, w_fused, bias, lin, compute_dtype):
    """ConvTranspose1d(kernel=3, stride=1, padding=1) as a single MXU matmul.

    h        : (rows, 128) f32, rows ordered (b, l), channels zero-padded to 128 lanes.
    w_fused  : (3*128, 128) compute_dtype; taps stacked on the contraction axis so that
               rows [0:128]   pair with h[l-1],
               rows [128:256] pair with h[l],
               rows [256:384] pair with h[l+1].
    bias     : (1, 128) f32 (zero in padded lanes).
    lin      : static per-sample length (rows == batch * lin).
    """
    rows = h.shape[0]
    # Per-sample boundary mask as a single (rows, 1) column (broadcast along lanes).
    pos = jax.lax.broadcasted_iota(jnp.int32, (rows, 1), 0) % lin
    h_m1 = jnp.where(pos == 0, 0.0, pltpu.roll(h, 1, 0))               # h[:, l-1]
    h_p1 = jnp.where(pos == lin - 1, 0.0, pltpu.roll(h, rows - 1, 0))  # h[:, l+1]
    hk = jnp.concatenate([h_m1, h, h_p1], axis=1)                      # (rows, 384), 128-aligned
    acc = jnp.dot(hk.astype(compute_dtype), w_fused,
                  preferred_element_type=jnp.float32)
    return acc + bias


def _make_decoder_kernel(nblocks, lens, compute_dtype):
    """Fully fused decoder: nblocks * (ConvT -> BN(train) -> ReLU -> Linear -> ReLU) -> ConvT.

    Ref layout (all in VMEM, whole arrays, single program):
      refs[0]                    : x      (B*L0, 128) f32
      per block i (6 refs)       : w_conv (384,128) cdt | b_conv (1,128) f32 | gamma (1,128) f32
                                   beta (1,128) f32     | w_lin  (B*Lout, B*Lin) cdt (block-diag)
                                   b_lin (B*Lout, 1) f32
      final (2 refs)             : w_conv_f (384,128) cdt | b_conv_f (1,128) f32
      refs[-1]                   : output (B*L_last, 128) f32
    """
    def kernel(*refs):
        x_ref = refs[0]
        o_ref = refs[-1]
        h = x_ref[...]                                    # (B*L0, 128) f32
        idx = 1
        for i in range(nblocks):
            wc, bc, gamma, beta, wl, bl = refs[idx:idx + 6]
            idx += 6

            # --- ConvTranspose1d (one fused matmul) ---
            acc = _convt3(h, wc[...], bc[...], lens[i], compute_dtype)   # (B*Lin, 128) f32

            # --- BatchNorm1d (training-mode biased batch stats), one pass ---
            inv_n = 1.0 / acc.shape[0]
            mean = jnp.sum(acc, axis=0, keepdims=True) * inv_n
            ex2 = jnp.sum(acc * acc, axis=0, keepdims=True) * inv_n
            var = ex2 - mean * mean
            y = (acc - mean) * jax.lax.rsqrt(var + _BN_EPS)
            y = jnp.maximum(y * gamma[...] + beta[...], 0.0)             # affine + ReLU

            # --- Linear over the length axis, all batches at once (block-diag weight) ---
            z = jnp.dot(wl[...], y.astype(compute_dtype),
                        preferred_element_type=jnp.float32) + bl[...]
            h = jnp.maximum(z, 0.0)                                      # ReLU, stays f32

        # --- final plain ConvTranspose1d ---
        wc_f, bc_f = refs[idx], refs[idx + 1]
        o_ref[...] = _convt3(h, wc_f[...], bc_f[...], lens[nblocks], compute_dtype)

    return kernel


# --------------------------------------------------------------------------------------
# Wrapper: layout / parameter packing only (no data math outside the kernel)
# --------------------------------------------------------------------------------------
def _pad_lanes(a):
    return jnp.pad(a, [(0, 0)] * (a.ndim - 1) + [(0, _LANE - a.shape[-1])])


def _fused_conv_weight(w_convT, compute_dtype):
    # PyTorch ConvTranspose1d weight: (Cin, Cout, 3). Taps pairing with x[l-1], x[l], x[l+1]
    # are w[..., 2], w[..., 1], w[..., 0]. Stack on the contraction axis, channel-padded to 128.
    cin, cout, _ = w_convT.shape
    taps = (w_convT[:, :, 2], w_convT[:, :, 1], w_convT[:, :, 0])
    taps = [jnp.pad(t, ((0, _LANE - cin), (0, _LANE - cout))) for t in taps]
    return jnp.concatenate(taps, axis=0).astype(compute_dtype)          # (3*128, 128)


def _pack_params(params, batch, compute_dtype):
    blocks, final = params
    flat = []
    for p in blocks:
        cout = p["w_convT"].shape[1]
        lout = p["w_lin"].shape[0]
        flat += [
            _fused_conv_weight(p["w_convT"], compute_dtype),
            _pad_lanes(p["b_conv"].reshape(1, cout)),
            _pad_lanes(p["gamma"].reshape(1, cout)),
            _pad_lanes(p["beta"].reshape(1, cout)),
            # block-diagonal kron(I_B, W_lin): one matmul handles every batch element
            jnp.kron(jnp.eye(batch, dtype=p["w_lin"].dtype), p["w_lin"]).astype(compute_dtype),
            jnp.tile(p["b_lin"], batch).reshape(batch * lout, 1),
        ]
    cout_f = final["w_convT"].shape[1]
    flat += [
        _fused_conv_weight(final["w_convT"], compute_dtype),
        _pad_lanes(final["b_conv"].reshape(1, cout_f)),
    ]
    return flat


def vae_decoder_forward(x, params, compute_dtype=jnp.bfloat16):
    """x: (B, C0, L0) float32 NCL -> (B, out_channels, L_last) float32 NCL."""
    blocks, final = params
    b, c0, l0 = x.shape
    nblocks = len(blocks)
    lens = [l0] + [p["w_lin"].shape[0] for p in blocks]   # conv input length per layer
    l_last = lens[-1]
    out_c = final["w_convT"].shape[1]

    # channels-last flat layout, rows ordered (b, l), channels zero-padded to 128 lanes
    h0 = _pad_lanes(jnp.transpose(x, (0, 2, 1)).reshape(b * l0, c0))

    flat = _pack_params(params, b, compute_dtype)
    n_in = 1 + len(flat)

    # rough cost hint for the XLA scheduler around the custom call
    flops = 0
    for i in range(nblocks):
        flops += 2 * (b * lens[i]) * (3 * _LANE) * _LANE           # fused conv matmul
        flops += 2 * (b * lens[i + 1]) * (b * lens[i]) * _LANE     # block-diag linear matmul
    flops += 2 * (b * l_last) * (3 * _LANE) * _LANE
    bytes_accessed = (4 * h0.size + 4 * b * l_last * _LANE
                      + sum(a.size * a.dtype.itemsize for a in flat))

    out = pl.pallas_call(
        _make_decoder_kernel(nblocks, tuple(lens), compute_dtype),
        out_shape=jax.ShapeDtypeStruct((b * l_last, _LANE), jnp.float32),
        in_specs=[pl.BlockSpec(memory_space=pltpu.MemorySpace.VMEM)] * n_in,
        out_specs=pl.BlockSpec(memory_space=pltpu.MemorySpace.VMEM),
        compiler_params=pltpu.CompilerParams(vmem_limit_bytes=32 * 1024 * 1024),
        cost_estimate=pl.CostEstimate(flops=int(flops), transcendentals=0,
                                      bytes_accessed=int(bytes_accessed)),
    )(h0, *flat)

    return jnp.transpose(out.reshape(b, l_last, _LANE)[:, :, :out_c], (0, 2, 1))


# --------------------------------------------------------------------------------------
# Deterministic synthetic parameters (shapes follow the PyTorch __init__)
# --------------------------------------------------------------------------------------
def init_params(key, inversed_dims, inversed_sample_dims, out_channels):
    blocks = []
    in_c, in_s = inversed_dims[0], inversed_sample_dims[0]
    for c, s in zip(inversed_dims[1:], inversed_sample_dims[1:]):
        key, k1, k2, k3, k4, k5, k6 = jax.random.split(key, 7)
        blocks.append(dict(
            w_convT=0.1 * jax.random.normal(k1, (in_c, c, 3), jnp.float32),
            b_conv=0.1 * jax.random.normal(k2, (c,), jnp.float32),
            gamma=1.0 + 0.1 * jax.random.normal(k3, (c,), jnp.float32),
            beta=0.1 * jax.random.normal(k4, (c,), jnp.float32),
            w_lin=0.1 * jax.random.normal(k5, (s, in_s), jnp.float32),
            b_lin=0.1 * jax.random.normal(k6, (s,), jnp.float32),
        ))
        in_c, in_s = c, s
    key, k1, k2 = jax.random.split(key, 3)
    final = dict(
        w_convT=0.1 * jax.random.normal(k1, (in_c, out_channels, 3), jnp.float32),
        b_conv=0.1 * jax.random.normal(k2, (out_channels,), jnp.float32),
    )
    return blocks, final


# --------------------------------------------------------------------------------------
# Pure-JAX f32 reference (NCL throughout), used only to validate the kernel.
# --------------------------------------------------------------------------------------
def ref_forward(x, params):
    blocks, final = params
    hp_prec = jax.lax.Precision.HIGHEST

    def convT(h, w_t, bias):
        bsz, cin, length = h.shape
        hp = jnp.pad(h, ((0, 0), (0, 0), (1, 1)))
        out = bias[None, :, None]
        for k in range(3):
            out = out + jnp.einsum("bcl,co->bol", hp[:, :, 2 - k:2 - k + length],
                                   w_t[:, :, k], precision=hp_prec)
        return out

    h = x
    for p in blocks:
        h = convT(h, p["w_convT"], p["b_conv"])
        mean = h.mean(axis=(0, 2), keepdims=True)
        var = ((h - mean) ** 2).mean(axis=(0, 2), keepdims=True)
        h = (h - mean) / jnp.sqrt(var + _BN_EPS)
        h = h * p["gamma"][None, :, None] + p["beta"][None, :, None]
        h = jnp.maximum(h, 0.0)
        h = jnp.einsum("bcl,jl->bcj", h, p["w_lin"], precision=hp_prec) + p["b_lin"][None, None, :]
        h = jnp.maximum(h, 0.0)
    return convT(h, final["w_convT"], final["b_conv"])


# --------------------------------------------------------------------------------------
if __name__ == "__main__":
    inversed_dims = [8, 16, 32]          # latent channels -> decoder channels
    inversed_sample_dims = [8, 16, 32]   # latent length   -> decoder lengths
    out_channels = 12
    batch = 2

    key = jax.random.PRNGKey(0)
    key, xkey = jax.random.split(key)
    x = jax.random.normal(xkey, (batch, inversed_dims[0], inversed_sample_dims[0]), jnp.float32)
    params = init_params(key, inversed_dims, inversed_sample_dims, out_channels)

    ref = ref_forward(x, params)

    # Structural check: f32 matmul path must match the pure-JAX reference tightly.
    fwd_f32 = jax.jit(functools.partial(vae_decoder_forward, compute_dtype=jnp.float32))
    out_f32 = jax.block_until_ready(fwd_f32(x, params))
    assert out_f32.shape == (batch, out_channels, inversed_sample_dims[-1]), out_f32.shape
    err32 = float(jnp.max(jnp.abs(out_f32 - ref)))
    assert jnp.allclose(out_f32, ref, atol=1e-3, rtol=1e-3), f"f32 max abs err = {err32}"

    # Production path: bf16 MXU operands with f32 accumulation / f32 BN (looser tolerance).
    fwd = jax.jit(vae_decoder_forward)
    out = jax.block_until_ready(fwd(x, params))
    assert out.shape == (batch, out_channels, inversed_sample_dims[-1]), out.shape
    errbf = float(jnp.max(jnp.abs(out - ref)))
    assert jnp.allclose(out, ref, atol=5e-2, rtol=5e-2), f"bf16 max abs err = {errbf}"

    print("KERNEL_OK")
</pallas_src>

<mosaic_0001>
module attributes {stable_mosaic.version = 11 : i64} {
  func.func @kernel(%arg0: memref<16x128xf32, #tpu.memory_space<vmem>>, %arg1: memref<384x128xf32, #tpu.memory_space<vmem>>, %arg2: memref<1x128xf32, #tpu.memory_space<vmem>>, %arg3: memref<1x128xf32, #tpu.memory_space<vmem>>, %arg4: memref<1x128xf32, #tpu.memory_space<vmem>>, %arg5: memref<32x16xf32, #tpu.memory_space<vmem>>, %arg6: memref<32x1xf32, #tpu.memory_space<vmem>>, %arg7: memref<384x128xf32, #tpu.memory_space<vmem>>, %arg8: memref<1x128xf32, #tpu.memory_space<vmem>>, %arg9: memref<1x128xf32, #tpu.memory_space<vmem>>, %arg10: memref<1x128xf32, #tpu.memory_space<vmem>>, %arg11: memref<64x32xf32, #tpu.memory_space<vmem>>, %arg12: memref<64x1xf32, #tpu.memory_space<vmem>>, %arg13: memref<384x128xf32, #tpu.memory_space<vmem>>, %arg14: memref<1x128xf32, #tpu.memory_space<vmem>>, %arg15: memref<64x128xf32, #tpu.memory_space<vmem>>) attributes {dimension_semantics = [], scalar_prefetch = 0 : i64, scratch_operands = 0 : i64, tpu.core_type = #tpu.core_type<tc>} {
    %c0 = arith.constant 0 : index
    %c0_0 = arith.constant 0 : index
    %0 = vector.load %arg0[%c0, %c0_0] : memref<16x128xf32, #tpu.memory_space<vmem>>, vector<16x128xf32>
    %c0_1 = arith.constant 0 : index
    %c0_2 = arith.constant 0 : index
    %1 = vector.load %arg1[%c0_1, %c0_2] : memref<384x128xf32, #tpu.memory_space<vmem>>, vector<384x128xf32>
    %c0_3 = arith.constant 0 : index
    %c0_4 = arith.constant 0 : index
    %2 = vector.load %arg2[%c0_3, %c0_4] : memref<1x128xf32, #tpu.memory_space<vmem>>, vector<1x128xf32>
    %3 = tpu.iota {dimensions = array<i32: 0>} : vector<16x1xi32>
    %c8_i32 = arith.constant 8 : i32
    %c0_i32 = arith.constant 0 : i32
    %4 = arith.cmpi eq, %c8_i32, %c0_i32 : i32
    %c1_i32 = arith.constant 1 : i32
    %5 = arith.select %4, %c1_i32, %c8_i32 : i32
    %6 = vector.broadcast %5 : i32 to vector<16x1xi32>
    %7 = arith.remsi %3, %6 : vector<16x1xi32>
    %c0_i32_5 = arith.constant 0 : i32
    %8 = vector.broadcast %c0_i32_5 : i32 to vector<16x1xi32>
    %9 = arith.cmpi ne, %7, %8 : vector<16x1xi32>
    %c0_i32_6 = arith.constant 0 : i32
    %10 = vector.broadcast %c0_i32_6 : i32 to vector<16x1xi32>
    %11 = arith.cmpi slt, %7, %10 : vector<16x1xi32>
    %c0_i32_7 = arith.constant 0 : i32
    %12 = arith.cmpi slt, %5, %c0_i32_7 : i32
    %13 = vector.broadcast %12 : i1 to vector<16x1xi1>
    %14 = vector.broadcast %13 : vector<16x1xi1> to vector<16x1xi1>
    %15 = arith.xori %11, %14 : vector<16x1xi1>
    %16 = arith.andi %15, %9 : vector<16x1xi1>
    %17 = vector.broadcast %5 : i32 to vector<16x1xi32>
    %18 = arith.addi %7, %17 : vector<16x1xi32>
    %19 = arith.select %16, %18, %7 : vector<16x1xi1>, vector<16x1xi32>
    %c0_i32_8 = arith.constant 0 : i32
    %20 = vector.broadcast %c0_i32_8 : i32 to vector<16x1xi32>
    %21 = arith.cmpi eq, %19, %20 : vector<16x1xi32>
    %c1_i32_9 = arith.constant 1 : i32
    %22 = tpu.dynamic_rotate %0 by %c1_i32_9 dim 0 : vector<16x128xf32>, i32 -> vector<16x128xf32>
    %cst = arith.constant 0.000000e+00 : f32
    %23 = vector.shape_cast %21 : vector<16x1xi1> to vector<16x1xi1>
    %24 = vector.broadcast %23 : vector<16x1xi1> to vector<16x128xi1>
    %25 = vector.broadcast %cst : f32 to vector<16x128xf32>
    %26 = arith.select %24, %25, %22 : vector<16x128xi1>, vector<16x128xf32>
    %c7_i32 = arith.constant 7 : i32
    %27 = vector.broadcast %c7_i32 : i32 to vector<16x1xi32>
    %28 = arith.cmpi eq, %19, %27 : vector<16x1xi32>
    %c15_i32 = arith.constant 15 : i32
    %29 = tpu.dynamic_rotate %0 by %c15_i32 dim 0 : vector<16x128xf32>, i32 -> vector<16x128xf32>
    %cst_10 = arith.constant 0.000000e+00 : f32
    %30 = vector.shape_cast %28 : vector<16x1xi1> to vector<16x1xi1>
    %31 = vector.broadcast %30 : vector<16x1xi1> to vector<16x128xi1>
    %32 = vector.broadcast %cst_10 : f32 to vector<16x128xf32>
    %33 = arith.select %31, %32, %29 : vector<16x128xi1>, vector<16x128xf32>
    %34 = tpu.concatenate %26, %0, %33 in 1 : vector<16x128xf32>, vector<16x128xf32>, vector<16x128xf32> -> vector<16x384xf32>
    %cst_11 = arith.constant dense<0.000000e+00> : vector<16x128xf32>
    %35 = tpu.matmul %34, %1, %cst_11 {dimension_numbers = #tpu.dot_dimension_numbers<[1], [0], [0], [1], [0, 0, 1, 1], [], []>} : vector<16x384xf32>, vector<384x128xf32>, vector<16x128xf32> -> vector<16x128xf32>
    %36 = vector.broadcast %2 : vector<1x128xf32> to vector<16x128xf32>
    %37 = arith.addf %35, %36 : vector<16x128xf32>
    %cst_12 = arith.constant dense<0.000000e+00> : vector<128xf32>
    %38 = vector.multi_reduction <add>, %37, %cst_12 [0] : vector<16x128xf32> to vector<128xf32>
    %39 = vector.shape_cast %38 : vector<128xf32> to vector<1x128xf32>
    %cst_13 = arith.constant 6.250000e-02 : f32
    %40 = vector.broadcast %cst_13 : f32 to vector<1x128xf32>
    %41 = arith.mulf %39, %40 : vector<1x128xf32>
    %42 = arith.mulf %37, %37 : vector<16x128xf32>
    %cst_14 = arith.constant dense<0.000000e+00> : vector<128xf32>
    %43 = vector.multi_reduction <add>, %42, %cst_14 [0] : vector<16x128xf32> to vector<128xf32>
    %44 = vector.shape_cast %43 : vector<128xf32> to vector<1x128xf32>
    %cst_15 = arith.constant 6.250000e-02 : f32
    %45 = vector.broadcast %cst_15 : f32 to vector<1x128xf32>
    %46 = arith.mulf %44, %45 : vector<1x128xf32>
    %47 = arith.mulf %41, %41 : vector<1x128xf32>
    %48 = arith.subf %46, %47 : vector<1x128xf32>
    %49 = vector.broadcast %41 : vector<1x128xf32> to vector<16x128xf32>
    %50 = arith.subf %37, %49 : vector<16x128xf32>
    %cst_16 = arith.constant 9.99999974E-6 : f32
    %51 = vector.broadcast %cst_16 : f32 to vector<1x128xf32>
    %52 = arith.addf %48, %51 : vector<1x128xf32>
    %53 = math.rsqrt %52 : vector<1x128xf32>
    %54 = vector.broadcast %53 : vector<1x128xf32> to vector<16x128xf32>
    %55 = arith.mulf %50, %54 : vector<16x128xf32>
    %c0_17 = arith.constant 0 : index
    %c0_18 = arith.constant 0 : index
    %56 = vector.load %arg3[%c0_17, %c0_18] : memref<1x128xf32, #tpu.memory_space<vmem>>, vector<1x128xf32>
    %57 = vector.broadcast %56 : vector<1x128xf32> to vector<16x128xf32>
    %58 = arith.mulf %55, %57 : vector<16x128xf32>
    %c0_19 = arith.constant 0 : index
    %c0_20 = arith.constant 0 : index
    %59 = vector.load %arg4[%c0_19, %c0_20] : memref<1x128xf32, #tpu.memory_space<vmem>>, vector<1x128xf32>
    %60 = vector.broadcast %59 : vector<1x128xf32> to vector<16x128xf32>
    %61 = arith.addf %58, %60 : vector<16x128xf32>
    %cst_21 = arith.constant 0.000000e+00 : f32
    %62 = vector.broadcast %cst_21 : f32 to vector<16x128xf32>
    %63 = arith.maximumf %61, %62 : vector<16x128xf32>
    %c0_22 = arith.constant 0 : index
    %c0_23 = arith.constant 0 : index
    %64 = vector.load %arg5[%c0_22, %c0_23] : memref<32x16xf32, #tpu.memory_space<vmem>>, vector<32x16xf32>
    %cst_24 = arith.constant dense<0.000000e+00> : vector<32x128xf32>
    %65 = tpu.matmul %64, %63, %cst_24 {dimension_numbers = #tpu.dot_dimension_numbers<[1], [0], [0], [1], [0, 0, 1, 1], [], []>} : vector<32x16xf32>, vector<16x128xf32>, vector<32x128xf32> -> vector<32x128xf32>
    %c0_25 = arith.constant 0 : index
    %c0_26 = arith.constant 0 : index
    %66 = vector.load %arg6[%c0_25, %c0_26] : memref<32x1xf32, #tpu.memory_space<vmem>>, vector<32x1xf32>
    %67 = vector.broadcast %66 : vector<32x1xf32> to vector<32x128xf32>
    %68 = arith.addf %65, %67 : vector<32x128xf32>
    %cst_27 = arith.constant 0.000000e+00 : f32
    %69 = vector.broadcast %cst_27 : f32 to vector<32x128xf32>
    %70 = arith.maximumf %68, %69 : vector<32x128xf32>
    %c0_28 = arith.constant 0 : index
    %c0_29 = arith.constant 0 : index
    %71 = vector.load %arg7[%c0_28, %c0_29] : memref<384x128xf32, #tpu.memory_space<vmem>>, vector<384x128xf32>
    %c0_30 = arith.constant 0 : index
    %c0_31 = arith.constant 0 : index
    %72 = vector.load %arg8[%c0_30, %c0_31] : memref<1x128xf32, #tpu.memory_space<vmem>>, vector<1x128xf32>
    %73 = tpu.iota {dimensions = array<i32: 0>} : vector<32x1xi32>
    %c16_i32 = arith.constant 16 : i32
    %c0_i32_32 = arith.constant 0 : i32
    %74 = arith.cmpi eq, %c16_i32, %c0_i32_32 : i32
    %c1_i32_33 = arith.constant 1 : i32
    %75 = arith.select %74, %c1_i32_33, %c16_i32 : i32
    %76 = vector.broadcast %75 : i32 to vector<32x1xi32>
    %77 = arith.remsi %73, %76 : vector<32x1xi32>
    %c0_i32_34 = arith.constant 0 : i32
    %78 = vector.broadcast %c0_i32_34 : i32 to vector<32x1xi32>
    %79 = arith.cmpi ne, %77, %78 : vector<32x1xi32>
    %c0_i32_35 = arith.constant 0 : i32
    %80 = vector.broadcast %c0_i32_35 : i32 to vector<32x1xi32>
    %81 = arith.cmpi slt, %77, %80 : vector<32x1xi32>
    %c0_i32_36 = arith.constant 0 : i32
    %82 = arith.cmpi slt, %75, %c0_i32_36 : i32
    %83 = vector.broadcast %82 : i1 to vector<32x1xi1>
    %84 = vector.broadcast %83 : vector<32x1xi1> to vector<32x1xi1>
    %85 = arith.xori %81, %84 : vector<32x1xi1>
    %86 = arith.andi %85, %79 : vector<32x1xi1>
    %87 = vector.broadcast %75 : i32 to vector<32x1xi32>
    %88 = arith.addi %77, %87 : vector<32x1xi32>
    %89 = arith.select %86, %88, %77 : vector<32x1xi1>, vector<32x1xi32>
    %c0_i32_37 = arith.constant 0 : i32
    %90 = vector.broadcast %c0_i32_37 : i32 to vector<32x1xi32>
    %91 = arith.cmpi eq, %89, %90 : vector<32x1xi32>
    %c1_i32_38 = arith.constant 1 : i32
    %92 = tpu.dynamic_rotate %70 by %c1_i32_38 dim 0 : vector<32x128xf32>, i32 -> vector<32x128xf32>
    %cst_39 = arith.constant 0.000000e+00 : f32
    %93 = vector.shape_cast %91 : vector<32x1xi1> to vector<32x1xi1>
    %94 = vector.broadcast %93 : vector<32x1xi1> to vector<32x128xi1>
    %95 = vector.broadcast %cst_39 : f32 to vector<32x128xf32>
    %96 = arith.select %94, %95, %92 : vector<32x128xi1>, vector<32x128xf32>
    %c15_i32_40 = arith.constant 15 : i32
    %97 = vector.broadcast %c15_i32_40 : i32 to vector<32x1xi32>
    %98 = arith.cmpi eq, %89, %97 : vector<32x1xi32>
    %c31_i32 = arith.constant 31 : i32
    %99 = tpu.dynamic_rotate %70 by %c31_i32 dim 0 : vector<32x128xf32>, i32 -> vector<32x128xf32>
    %cst_41 = arith.constant 0.000000e+00 : f32
    %100 = vector.shape_cast %98 : vector<32x1xi1> to vector<32x1xi1>
    %101 = vector.broadcast %100 : vector<32x1xi1> to vector<32x128xi1>
    %102 = vector.broadcast %cst_41 : f32 to vector<32x128xf32>
    %103 = arith.select %101, %102, %99 : vector<32x128xi1>, vector<32x128xf32>
    %104 = tpu.concatenate %96, %70, %103 in 1 : vector<32x128xf32>, vector<32x128xf32>, vector<32x128xf32> -> vector<32x384xf32>
    %cst_42 = arith.constant dense<0.000000e+00> : vector<32x128xf32>
    %105 = tpu.matmul %104, %71, %cst_42 {dimension_numbers = #tpu.dot_dimension_numbers<[1], [0], [0], [1], [0, 0, 1, 1], [], []>} : vector<32x384xf32>, vector<384x128xf32>, vector<32x128xf32> -> vector<32x128xf32>
    %106 = vector.broadcast %72 : vector<1x128xf32> to vector<32x128xf32>
    %107 = arith.addf %105, %106 : vector<32x128xf32>
    %cst_43 = arith.constant dense<0.000000e+00> : vector<128xf32>
    %108 = vector.multi_reduction <add>, %107, %cst_43 [0] : vector<32x128xf32> to vector<128xf32>
    %109 = vector.shape_cast %108 : vector<128xf32> to vector<1x128xf32>
    %cst_44 = arith.constant 3.125000e-02 : f32
    %110 = vector.broadcast %cst_44 : f32 to vector<1x128xf32>
    %111 = arith.mulf %109, %110 : vector<1x128xf32>
    %112 = arith.mulf %107, %107 : vector<32x128xf32>
    %cst_45 = arith.constant dense<0.000000e+00> : vector<128xf32>
    %113 = vector.multi_reduction <add>, %112, %cst_45 [0] : vector<32x128xf32> to vector<128xf32>
    %114 = vector.shape_cast %113 : vector<128xf32> to vector<1x128xf32>
    %cst_46 = arith.constant 3.125000e-02 : f32
    %115 = vector.broadcast %cst_46 : f32 to vector<1x128xf32>
    %116 = arith.mulf %114, %115 : vector<1x128xf32>
    %117 = arith.mulf %111, %111 : vector<1x128xf32>
    %118 = arith.subf %116, %117 : vector<1x128xf32>
    %119 = vector.broadcast %111 : vector<1x128xf32> to vector<32x128xf32>
    %120 = arith.subf %107, %119 : vector<32x128xf32>
    %cst_47 = arith.constant 9.99999974E-6 : f32
    %121 = vector.broadcast %cst_47 : f32 to vector<1x128xf32>
    %122 = arith.addf %118, %121 : vector<1x128xf32>
    %123 = math.rsqrt %122 : vector<1x128xf32>
    %124 = vector.broadcast %123 : vector<1x128xf32> to vector<32x128xf32>
    %125 = arith.mulf %120, %124 : vector<32x128xf32>
    %c0_48 = arith.constant 0 : index
    %c0_49 = arith.constant 0 : index
    %126 = vector.load %arg9[%c0_48, %c0_49] : memref<1x128xf32, #tpu.memory_space<vmem>>, vector<1x128xf32>
    %127 = vector.broadcast %126 : vector<1x128xf32> to vector<32x128xf32>
    %128 = arith.mulf %125, %127 : vector<32x128xf32>
    %c0_50 = arith.constant 0 : index
    %c0_51 = arith.constant 0 : index
    %129 = vector.load %arg10[%c0_50, %c0_51] : memref<1x128xf32, #tpu.memory_space<vmem>>, vector<1x128xf32>
    %130 = vector.broadcast %129 : vector<1x128xf32> to vector<32x128xf32>
    %131 = arith.addf %128, %130 : vector<32x128xf32>
    %cst_52 = arith.constant 0.000000e+00 : f32
    %132 = vector.broadcast %cst_52 : f32 to vector<32x128xf32>
    %133 = arith.maximumf %131, %132 : vector<32x128xf32>
    %c0_53 = arith.constant 0 : index
    %c0_54 = arith.constant 0 : index
    %134 = vector.load %arg11[%c0_53, %c0_54] : memref<64x32xf32, #tpu.memory_space<vmem>>, vector<64x32xf32>
    %cst_55 = arith.constant dense<0.000000e+00> : vector<64x128xf32>
    %135 = tpu.matmul %134, %133, %cst_55 {dimension_numbers = #tpu.dot_dimension_numbers<[1], [0], [0], [1], [0, 0, 1, 1], [], []>} : vector<64x32xf32>, vector<32x128xf32>, vector<64x128xf32> -> vector<64x128xf32>
    %c0_56 = arith.constant 0 : index
    %c0_57 = arith.constant 0 : index
    %136 = vector.load %arg12[%c0_56, %c0_57] : memref<64x1xf32, #tpu.memory_space<vmem>>, vector<64x1xf32>
    %137 = vector.broadcast %136 : vector<64x1xf32> to vector<64x128xf32>
    %138 = arith.addf %135, %137 : vector<64x128xf32>
    %cst_58 = arith.constant 0.000000e+00 : f32
    %139 = vector.broadcast %cst_58 : f32 to vector<64x128xf32>
    %140 = arith.maximumf %138, %139 : vector<64x128xf32>
    %c0_59 = arith.constant 0 : index
    %c0_60 = arith.constant 0 : index
    %141 = vector.load %arg13[%c0_59, %c0_60] : memref<384x128xf32, #tpu.memory_space<vmem>>, vector<384x128xf32>
    %c0_61 = arith.constant 0 : index
    %c0_62 = arith.constant 0 : index
    %142 = vector.load %arg14[%c0_61, %c0_62] : memref<1x128xf32, #tpu.memory_space<vmem>>, vector<1x128xf32>
    %143 = tpu.iota {dimensions = array<i32: 0>} : vector<64x1xi32>
    %c32_i32 = arith.constant 32 : i32
    %c0_i32_63 = arith.constant 0 : i32
    %144 = arith.cmpi eq, %c32_i32, %c0_i32_63 : i32
    %c1_i32_64 = arith.constant 1 : i32
    %145 = arith.select %144, %c1_i32_64, %c32_i32 : i32
    %146 = vector.broadcast %145 : i32 to vector<64x1xi32>
    %147 = arith.remsi %143, %146 : vector<64x1xi32>
    %c0_i32_65 = arith.constant 0 : i32
    %148 = vector.broadcast %c0_i32_65 : i32 to vector<64x1xi32>
    %149 = arith.cmpi ne, %147, %148 : vector<64x1xi32>
    %c0_i32_66 = arith.constant 0 : i32
    %150 = vector.broadcast %c0_i32_66 : i32 to vector<64x1xi32>
    %151 = arith.cmpi slt, %147, %150 : vector<64x1xi32>
    %c0_i32_67 = arith.constant 0 : i32
    %152 = arith.cmpi slt, %145, %c0_i32_67 : i32
    %153 = vector.broadcast %152 : i1 to vector<64x1xi1>
    %154 = vector.broadcast %153 : vector<64x1xi1> to vector<64x1xi1>
    %155 = arith.xori %151, %154 : vector<64x1xi1>
    %156 = arith.andi %155, %149 : vector<64x1xi1>
    %157 = vector.broadcast %145 : i32 to vector<64x1xi32>
    %158 = arith.addi %147, %157 : vector<64x1xi32>
    %159 = arith.select %156, %158, %147 : vector<64x1xi1>, vector<64x1xi32>
    %c0_i32_68 = arith.constant 0 : i32
    %160 = vector.broadcast %c0_i32_68 : i32 to vector<64x1xi32>
    %161 = arith.cmpi eq, %159, %160 : vector<64x1xi32>
    %c1_i32_69 = arith.constant 1 : i32
    %162 = tpu.dynamic_rotate %140 by %c1_i32_69 dim 0 : vector<64x128xf32>, i32 -> vector<64x128xf32>
    %cst_70 = arith.constant 0.000000e+00 : f32
    %163 = vector.shape_cast %161 : vector<64x1xi1> to vector<64x1xi1>
    %164 = vector.broadcast %163 : vector<64x1xi1> to vector<64x128xi1>
    %165 = vector.broadcast %cst_70 : f32 to vector<64x128xf32>
    %166 = arith.select %164, %165, %162 : vector<64x128xi1>, vector<64x128xf32>
    %c31_i32_71 = arith.constant 31 : i32
    %167 = vector.broadcast %c31_i32_71 : i32 to vector<64x1xi32>
    %168 = arith.cmpi eq, %159, %167 : vector<64x1xi32>
    %c63_i32 = arith.constant 63 : i32
    %169 = tpu.dynamic_rotate %140 by %c63_i32 dim 0 : vector<64x128xf32>, i32 -> vector<64x128xf32>
    %cst_72 = arith.constant 0.000000e+00 : f32
    %170 = vector.shape_cast %168 : vector<64x1xi1> to vector<64x1xi1>
    %171 = vector.broadcast %170 : vector<64x1xi1> to vector<64x128xi1>
    %172 = vector.broadcast %cst_72 : f32 to vector<64x128xf32>
    %173 = arith.select %171, %172, %169 : vector<64x128xi1>, vector<64x128xf32>
    %174 = tpu.concatenate %166, %140, %173 in 1 : vector<64x128xf32>, vector<64x128xf32>, vector<64x128xf32> -> vector<64x384xf32>
    %cst_73 = arith.constant dense<0.000000e+00> : vector<64x128xf32>
    %175 = tpu.matmul %174, %141, %cst_73 {dimension_numbers = #tpu.dot_dimension_numbers<[1], [0], [0], [1], [0, 0, 1, 1], [], []>} : vector<64x384xf32>, vector<384x128xf32>, vector<64x128xf32> -> vector<64x128xf32>
    %176 = vector.broadcast %142 : vector<1x128xf32> to vector<64x128xf32>
    %177 = arith.addf %175, %176 : vector<64x128xf32>
    %c0_74 = arith.constant 0 : index
    %c0_75 = arith.constant 0 : index
    %178 = vector.load %arg15[%c0_74, %c0_75] : memref<64x128xf32, #tpu.memory_space<vmem>>, vector<64x128xf32>
    tpu.vector_store %arg15[%c0_74, %c0_75], %177 {strides = array<i32>} : memref<64x128xf32, #tpu.memory_space<vmem>>, vector<64x128xf32>,
    return
  }
}

</mosaic_0001>

<bundles_post_ra>
// kernel: tile.18
= control target key start
LH: loop header
LB: loop body
LE: loop exit
PB: predicated region body
PF: predicated region fallthrough
CT: control target
= control target key end

     0   :  { %s22_s0 = inlined_call_operand.vmem [shape: f32[32], index: 0, kind: input, shape index: {}]   ;;  %s23_s1 = inlined_call_operand.vmem [shape: f32[2,32], index: 1, kind: output, shape index: {}]  }
   0x1   :  { %v4_v0 = vld [vmem:[%s22_s0] ss:$0 sm:$0xff] }
   0x2   :  { %5 = vst [vmem:[%s23_s1] sm:$0x3] %v4_v0 }

// kernel: tile.1
= control target key start
LH: loop header
LB: loop body
LE: loop exit
PB: predicated region body
PF: predicated region fallthrough
CT: control target
= control target key end

     0   :  { %s355_s8 = smov 125   ;;  %s356_s9 = smov 126   ;;  %vm8_vm0 = vcmask 7168   ;;  %s654_s0 = inlined_call_operand.vmem [shape: f32[2,32], index: 0, kind: input, shape index: {}]   ;;  %s655_s1 = inlined_call_operand.vmem [shape: f32[64,1], index: 1, kind: output, shape index: {}]  }
   0x1   :  { %v5_v0 = vld [vmem:[%s654_s0] sm:$0x3]  ;;  %s354_s0 = smov 127   ;;  %s357_s10 = smov 124  }
   0x2   :  { %6 = vst [vmem:[#allocation0] sm:$0x3] %v5_v0  ;;  %s358_s11 = smov 123   ;;  %s359_s12 = smov 122  }
   0x3   :  { %s360_s13 = smov 121   ;;  %s361_s14 = smov 120  }
   0x4   :  { %s362_s15 = smov 119   ;;  %s363_s16 = smov 118  }
   0x5   :  { %s364_s17 = smov 117   ;;  %s365_s18 = smov 116  }
   0x6   :  { %s366_s19 = smov 115   ;;  %s367_s20 = smov 114  }
   0x7   :  { %s368_s21 = smov 113   ;;  %s369_s22 = smov 112  }
   0x8   :  { %s370_s23 = smov 111   ;;  %s371_s24 = smov 110  }
   0x9   :  { %v12_v1 = vld [vmem:[#allocation0] sm:$0x3]   ;;  %s372_s25 = smov 109   ;;  %s373_s26 = smov 108  }
   0xa   :  { %v28_v2 = vld [vmem:[#allocation0] sm:$0x3]   ;;  %13 = vrot.lane.b32.xlu0 %v12_v1, %s354_s0  ;;  %s374_s27 = smov 107   ;;  %s375_s28 = smov 106  }
   0xb   :  { %29 = vrot.lane.b32.xlu1 %v28_v2, %s355_s8  ;;  %v20_v3 = vld [vmem:[#allocation0] sm:$0x3]   ;;  %s376_s29 = smov 105   ;;  %s377_s30 = smov 104  }
   0xc   :  { %v36_v4 = vld [vmem:[#allocation0] sm:$0x3]   ;;  %s378_s6 = smov 103   ;;  %s379_s7 = smov 102  }
   0xd   :  { %v44_v5 = vld [vmem:[#allocation0] sm:$0x3]   ;;  %s380_s0 = smov 101   ;;  %s381_s8 = smov 100  }
   0xe   :  { %21 = vrot.lane.b32.xlu0 %v20_v3, %s356_s9  ;;  %v52_v6 = vld [vmem:[#allocation0] sm:$0x3]   ;;  %s382_s9 = smov 99  }
   0xf   :  { %37 = vrot.lane.b32.xlu1 %v36_v4, %s357_s10  ;;  %v60_v7 = vld [vmem:[#allocation0] sm:$0x3]   ;;  %s383_s10 = smov 98  }
  0x10   :  { %v68_v8 = vld [vmem:[#allocation0] sm:$0x3]  }
  0x11   :  { %v76_v9 = vld [vmem:[#allocation0] sm:$0x3]  }
  0x12   :  { %45 = vrot.lane.b32.xlu0 %v44_v5, %s358_s11  ;;  %v84_v10 = vld [vmem:[#allocation0] sm:$0x3]   ;;  %s384_s11 = smov 97  }
  0x13   :  { %53 = vrot.lane.b32.xlu1 %v52_v6, %s359_s12  ;;  %v92_v11 = vld [vmem:[#allocation0] sm:$0x3]  }
  0x14   :  { %v100_v12 = vld [vmem:[#allocation0] sm:$0x3]  }
  0x15   :  { %v108_v13 = vld [vmem:[#allocation0] sm:$0x3]  }
  0x16   :  { %61 = vrot.lane.b32.xlu0 %v60_v7, %s360_s13  ;;  %v116_v14 = vld [vmem:[#allocation0] sm:$0x3]  }
  0x17   :  { %69 = vrot.lane.b32.xlu1 %v68_v8, %s361_s14  ;;  %v124_v15 = vld [vmem:[#allocation0] sm:$0x3]  }
  0x18   :  { %v132_v16 = vld [vmem:[#allocation0] sm:$0x3]  }
  0x19   :  { %v140_v17 = vld [vmem:[#allocation0] sm:$0x3]  }
  0x1a   :  { %77 = vrot.lane.b32.xlu0 %v76_v9, %s362_s15  ;;  %v148_v18 = vld [vmem:[#allocation0] sm:$0x3]  }
  0x1b   :  { %85 = vrot.lane.b32.xlu1 %v84_v10, %s363_s16  ;;  %v156_v19 = vld [vmem:[#allocation0] sm:$0x3]  }
  0x1c   :  { %v164_v20 = vld [vmem:[#allocation0] sm:$0x3]  }
  0x1d   :  { %v172_v21 = vld [vmem:[#allocation0] sm:$0x3]  }
  0x1e   :  { %93 = vrot.lane.b32.xlu0 %v92_v11, %s364_s17  ;;  %v180_v22 = vld [vmem:[#allocation0] sm:$0x3]  }
  0x1f   :  { %101 = vrot.lane.b32.xlu1 %v100_v12, %s365_s18  ;;  %v188_v23 = vld [vmem:[#allocation0] sm:$0x3]  }
  0x20   :  { %v196_v24 = vld [vmem:[#allocation0] sm:$0x3]  }
  0x21   :  { %v204_v25 = vld [vmem:[#allocation0] sm:$0x3]  }
  0x22   :  { %109 = vrot.lane.b32.xlu0 %v108_v13, %s366_s19  ;;  %v212_v26 = vld [vmem:[#allocation0] sm:$0x3]  }
  0x23   :  { %117 = vrot.lane.b32.xlu1 %v116_v14, %s367_s20  ;;  %v7_v27 = vld [vmem:[#allocation0] sm:$0x3]  }
  0x24   :  { %9 = vst.msk [vmem:[%s655_s1] sm:$0x1] %vm8_vm0, %v7_v27   ;;  %260 = vst.msk [vmem:[%s655_s1 + $0x1f] sm:$0x2] %vm8_vm0, %v7_v27   ;;  %v220_v28 = vld [vmem:[#allocation0] sm:$0x3]  }
  0x25   :  { %v228_v29 = vld [vmem:[#allocation0] sm:$0x3]  }
  0x26   :  { %125 = vrot.lane.b32.xlu0 %v124_v15, %s368_s21  ;;  %v236_v30 = vld [vmem:[#allocation0] sm:$0x3]  }
  0x27   :  { %133 = vrot.lane.b32.xlu1 %v132_v16, %s369_s22  ;;  %v244_v31 = vld [vmem:[#allocation0] sm:$0x3]  }
  0x28   :  { %v252_v32 = vld [vmem:[#allocation0] sm:$0x3]  }
  0x2a   :  { %141 = vrot.lane.b32.xlu0 %v140_v17, %s370_s23 }
  0x2b   :  { %149 = vrot.lane.b32.xlu1 %v148_v18, %s371_s24 }
  0x2e   :  { %157 = vrot.lane.b32.xlu0 %v156_v19, %s372_s25 }
  0x2f   :  { %165 = vrot.lane.b32.xlu1 %v164_v20, %s373_s26 }
  0x32   :  { %173 = vrot.lane.b32.xlu0 %v172_v21, %s374_s27 }
  0x33   :  { %181 = vrot.lane.b32.xlu1 %v180_v22, %s375_s28 }
  0x36   :  { %189 = vrot.lane.b32.xlu0 %v188_v23, %s376_s29 }
  0x37   :  { %197 = vrot.lane.b32.xlu1 %v196_v24, %s377_s30 }
  0x3a   :  { %205 = vrot.lane.b32.xlu0 %v204_v25, %s378_s6 }
  0x3b   :  { %213 = vrot.lane.b32.xlu1 %v212_v26, %s379_s7 }
  0x3e   :  { %221 = vrot.lane.b32.xlu0 %v220_v28, %s380_s0 }
  0x3f   :  { %229 = vrot.lane.b32.xlu1 %v228_v29, %s381_s8 }
  0x42   :  { %237 = vrot.lane.b32.xlu0 %v236_v30, %s382_s9 }
  0x43   :  { %245 = vrot.lane.b32.xlu1 %v244_v31, %s383_s10 }
  0x46   :  { %253 = vrot.lane.b32.xlu0 %v252_v32, %s384_s11 }
  0x7c   :  { %v14_v33 = vpop.permute.xlu0 %13  }
  0x7d   :  { %v30_v34 = vpop.permute.xlu1 %29   ;;  %261 = vst.msk [vmem:[%s655_s1 + $0x1] sm:$0x1] %vm8_vm0, %v14_v33   ;;  %262 = vst.msk [vmem:[%s655_s1 + $0x20] sm:$0x2] %vm8_vm0, %v14_v33  }
  0x7e   :  { %265 = vst.msk [vmem:[%s655_s1 + $0x3] sm:$0x1] %vm8_vm0, %v30_v34   ;;  %266 = vst.msk [vmem:[%s655_s1 + $0x22] sm:$0x2] %vm8_vm0, %v30_v34  }
  0x80   :  { %v22_v35 = vpop.permute.xlu0 %21  }
  0x81   :  { %v38_v36 = vpop.permute.xlu1 %37   ;;  %263 = vst.msk [vmem:[%s655_s1 + $0x2] sm:$0x1] %vm8_vm0, %v22_v35   ;;  %264 = vst.msk [vmem:[%s655_s1 + $0x21] sm:$0x2] %vm8_vm0, %v22_v35  }
  0x82   :  { %267 = vst.msk [vmem:[%s655_s1 + $0x4] sm:$0x1] %vm8_vm0, %v38_v36   ;;  %268 = vst.msk [vmem:[%s655_s1 + $0x23] sm:$0x2] %vm8_vm0, %v38_v36  }
  0x84   :  { %v46_v37 = vpop.permute.xlu0 %45  }
  0x85   :  { %v54_v38 = vpop.permute.xlu1 %53   ;;  %269 = vst.msk [vmem:[%s655_s1 + $0x5] sm:$0x1] %vm8_vm0, %v46_v37   ;;  %270 = vst.msk [vmem:[%s655_s1 + $0x24] sm:$0x2] %vm8_vm0, %v46_v37  }
  0x86   :  { %271 = vst.msk [vmem:[%s655_s1 + $0x6] sm:$0x1] %vm8_vm0, %v54_v38   ;;  %272 = vst.msk [vmem:[%s655_s1 + $0x25] sm:$0x2] %vm8_vm0, %v54_v38  }
  0x88   :  { %v62_v39 = vpop.permute.xlu0 %61  }
  0x89   :  { %v70_v40 = vpop.permute.xlu1 %69   ;;  %273 = vst.msk [vmem:[%s655_s1 + $0x7] sm:$0x1] %vm8_vm0, %v62_v39   ;;  %274 = vst.msk [vmem:[%s655_s1 + $0x26] sm:$0x2] %vm8_vm0, %v62_v39  }
  0x8a   :  { %275 = vst.msk [vmem:[%s655_s1 + $0x8] sm:$0x1] %vm8_vm0, %v70_v40   ;;  %276 = vst.msk [vmem:[%s655_s1 + $0x27] sm:$0x2] %vm8_vm0, %v70_v40  }
  0x8c   :  { %v78_v41 = vpop.permute.xlu0 %77  }
  0x8d   :  { %v86_v42 = vpop.permute.xlu1 %85   ;;  %277 = vst.msk [vmem:[%s655_s1 + $0x9] sm:$0x1] %vm8_vm0, %v78_v41   ;;  %278 = vst.msk [vmem:[%s655_s1 + $0x28] sm:$0x2] %vm8_vm0, %v78_v41  }
  0x8e   :  { %279 = vst.msk [vmem:[%s655_s1 + $0xa] sm:$0x1] %vm8_vm0, %v86_v42   ;;  %280 = vst.msk [vmem:[%s655_s1 + $0x29] sm:$0x2] %vm8_vm0, %v86_v42  }
  0x90   :  { %v94_v43 = vpop.permute.xlu0 %93  }
  0x91   :  { %v102_v44 = vpop.permute.xlu1 %101   ;;  %281 = vst.msk [vmem:[%s655_s1 + $0xb] sm:$0x1] %vm8_vm0, %v94_v43   ;;  %282 = vst.msk [vmem:[%s655_s1 + $0x2a] sm:$0x2] %vm8_vm0, %v94_v43  }
  0x92   :  { %283 = vst.msk [vmem:[%s655_s1 + $0xc] sm:$0x1] %vm8_vm0, %v102_v44   ;;  %284 = vst.msk [vmem:[%s655_s1 + $0x2b] sm:$0x2] %vm8_vm0, %v102_v44  }
  0x94   :  { %v110_v45 = vpop.permute.xlu0 %109  }
  0x95   :  { %v118_v46 = vpop.permute.xlu1 %117   ;;  %285 = vst.msk [vmem:[%s655_s1 + $0xd] sm:$0x1] %vm8_vm0, %v110_v45   ;;  %286 = vst.msk [vmem:[%s655_s1 + $0x2c] sm:$0x2] %vm8_vm0, %v110_v45  }
  0x96   :  { %287 = vst.msk [vmem:[%s655_s1 + $0xe] sm:$0x1] %vm8_vm0, %v118_v46   ;;  %288 = vst.msk [vmem:[%s655_s1 + $0x2d] sm:$0x2] %vm8_vm0, %v118_v46  }
  0x98   :  { %v126_v47 = vpop.permute.xlu0 %125  }
  0x99   :  { %v134_v48 = vpop.permute.xlu1 %133   ;;  %289 = vst.msk [vmem:[%s655_s1 + $0xf] sm:$0x1] %vm8_vm0, %v126_v47   ;;  %290 = vst.msk [vmem:[%s655_s1 + $0x2e] sm:$0x2] %vm8_vm0, %v126_v47  }
  0x9a   :  { %291 = vst.msk [vmem:[%s655_s1 + $0x10] sm:$0x1] %vm8_vm0, %v134_v48   ;;  %292 = vst.msk [vmem:[%s655_s1 + $0x2f] sm:$0x2] %vm8_vm0, %v134_v48  }
  0x9c   :  { %v142_v49 = vpop.permute.xlu0 %141  }
  0x9d   :  { %v150_v50 = vpop.permute.xlu1 %149   ;;  %293 = vst.msk [vmem:[%s655_s1 + $0x11] sm:$0x1] %vm8_vm0, %v142_v49   ;;  %294 = vst.msk [vmem:[%s655_s1 + $0x30] sm:$0x2] %vm8_vm0, %v142_v49  }
  0x9e   :  { %295 = vst.msk [vmem:[%s655_s1 + $0x12] sm:$0x1] %vm8_vm0, %v150_v50   ;;  %296 = vst.msk [vmem:[%s655_s1 + $0x31] sm:$0x2] %vm8_vm0, %v150_v50  }
  0xa0   :  { %v158_v51 = vpop.permute.xlu0 %157  }
  0xa1   :  { %v166_v52 = vpop.permute.xlu1 %165   ;;  %297 = vst.msk [vmem:[%s655_s1 + $0x13] sm:$0x1] %vm8_vm0, %v158_v51   ;;  %298 = vst.msk [vmem:[%s655_s1 + $0x32] sm:$0x2] %vm8_vm0, %v158_v51  }
  0xa2   :  { %299 = vst.msk [vmem:[%s655_s1 + $0x14] sm:$0x1] %vm8_vm0, %v166_v52   ;;  %300 = vst.msk [vmem:[%s655_s1 + $0x33] sm:$0x2] %vm8_vm0, %v166_v52  }
  0xa4   :  { %v174_v53 = vpop.permute.xlu0 %173  }
  0xa5   :  { %v182_v54 = vpop.permute.xlu1 %181   ;;  %301 = vst.msk [vmem:[%s655_s1 + $0x15] sm:$0x1] %vm8_vm0, %v174_v53   ;;  %302 = vst.msk [vmem:[%s655_s1 + $0x34] sm:$0x2] %vm8_vm0, %v174_v53  }
  0xa6   :  { %303 = vst.msk [vmem:[%s655_s1 + $0x16] sm:$0x1] %vm8_vm0, %v182_v54   ;;  %304 = vst.msk [vmem:[%s655_s1 + $0x35] sm:$0x2] %vm8_vm0, %v182_v54  }
  0xa8   :  { %v190_v55 = vpop.permute.xlu0 %189  }
  0xa9   :  { %v198_v56 = vpop.permute.xlu1 %197   ;;  %305 = vst.msk [vmem:[%s655_s1 + $0x17] sm:$0x1] %vm8_vm0, %v190_v55   ;;  %306 = vst.msk [vmem:[%s655_s1 + $0x36] sm:$0x2] %vm8_vm0, %v190_v55  }
  0xaa   :  { %307 = vst.msk [vmem:[%s655_s1 + $0x18] sm:$0x1] %vm8_vm0, %v198_v56   ;;  %308 = vst.msk [vmem:[%s655_s1 + $0x37] sm:$0x2] %vm8_vm0, %v198_v56  }
  0xac   :  { %v206_v57 = vpop.permute.xlu0 %205  }
  0xad   :  { %v214_v58 = vpop.permute.xlu1 %213   ;;  %309 = vst.msk [vmem:[%s655_s1 + $0x19] sm:$0x1] %vm8_vm0, %v206_v57   ;;  %310 = vst.msk [vmem:[%s655_s1 + $0x38] sm:$0x2] %vm8_vm0, %v206_v57  }
  0xae   :  { %311 = vst.msk [vmem:[%s655_s1 + $0x1a] sm:$0x1] %vm8_vm0, %v214_v58   ;;  %312 = vst.msk [vmem:[%s655_s1 + $0x39] sm:$0x2] %vm8_vm0, %v214_v58  }
  0xb0   :  { %v222_v59 = vpop.permute.xlu0 %221  }
  0xb1   :  { %v230_v60 = vpop.permute.xlu1 %229   ;;  %313 = vst.msk [vmem:[%s655_s1 + $0x1b] sm:$0x1] %vm8_vm0, %v222_v59   ;;  %314 = vst.msk [vmem:[%s655_s1 + $0x3a] sm:$0x2] %vm8_vm0, %v222_v59  }
  0xb2   :  { %315 = vst.msk [vmem:[%s655_s1 + $0x1c] sm:$0x1] %vm8_vm0, %v230_v60   ;;  %316 = vst.msk [vmem:[%s655_s1 + $0x3b] sm:$0x2] %vm8_vm0, %v230_v60  }
  0xb4   :  { %v238_v61 = vpop.permute.xlu0 %237  }
  0xb5   :  { %v246_v62 = vpop.permute.xlu1 %245   ;;  %317 = vst.msk [vmem:[%s655_s1 + $0x1d] sm:$0x1] %vm8_vm0, %v238_v61   ;;  %318 = vst.msk [vmem:[%s655_s1 + $0x3c] sm:$0x2] %vm8_vm0, %v238_v61  }
  0xb6   :  { %319 = vst.msk [vmem:[%s655_s1 + $0x1e] sm:$0x1] %vm8_vm0, %v246_v62   ;;  %320 = vst.msk [vmem:[%s655_s1 + $0x3d] sm:$0x2] %vm8_vm0, %v246_v62  }
  0xb8   :  { %v254_v63 = vpop.permute.xlu0 %253  }
  0xb9   :  { %321 = vst.msk [vmem:[%s655_s1 + $0x1f] sm:$0x1] %vm8_vm0, %v254_v63   ;;  %322 = vst.msk [vmem:[%s655_s1 + $0x3e] sm:$0x2] %vm8_vm0, %v254_v63  }

// kernel: tile.13
= control target key start
LH: loop header
LB: loop body
LE: loop exit
PB: predicated region body
PF: predicated region fallthrough
CT: control target
= control target key end

     0   :  { %s22_s0 = inlined_call_operand.vmem [shape: f32[16], index: 0, kind: input, shape index: {}]   ;;  %s23_s1 = inlined_call_operand.vmem [shape: f32[2,16], index: 1, kind: output, shape index: {}]  }
   0x1   :  { %v4_v0 = vld [vmem:[%s22_s0] ss:$0 sm:$0xff] }
   0x2   :  { %5 = vst [vmem:[%s23_s1] sm:$0x3] %v4_v0 }

// kernel: tile.0
= control target key start
LH: loop header
LB: loop body
LE: loop exit
PB: predicated region body
PF: predicated region fallthrough
CT: control target
= control target key end

     0   :  { %s131_s8 = smov 125   ;;  %s132_s9 = smov 126   ;;  %vm8_vm0 = vcmask 7168   ;;  %s222_s0 = inlined_call_operand.vmem [shape: f32[2,16], index: 0, kind: input, shape index: {}]   ;;  %s223_s1 = inlined_call_operand.vmem [shape: f32[32,1], index: 1, kind: output, shape index: {}]  }
   0x1   :  { %v5_v0 = vld [vmem:[%s222_s0] sm:$0x3]  ;;  %s130_s0 = smov 127   ;;  %s133_s10 = smov 124  }
   0x2   :  { %6 = vst [vmem:[#allocation0] sm:$0x3] %v5_v0  ;;  %s134_s11 = smov 123   ;;  %s135_s12 = smov 122  }
   0x3   :  { %s136_s13 = smov 121   ;;  %s137_s14 = smov 120  }
   0x4   :  { %s138_s17 = smov 119   ;;  %s139_s18 = smov 118  }
   0x5   :  { %s140_s19 = smov 117   ;;  %s141_s20 = smov 116  }
   0x6   :  { %s142_s21 = smov 115   ;;  %s143_s22 = smov 114  }
   0x7   :  { %s144_s23 = smov 113  }
   0x9   :  { %v10_v1 = vld [vmem:[#allocation0] sm:$0x3]  }
   0xa   :  { %v22_v2 = vld [vmem:[#allocation0] sm:$0x3]   ;;  %11 = vrot.lane.b32.xlu0 %v10_v1, %s130_s0 }
   0xb   :  { %23 = vrot.lane.b32.xlu1 %v22_v2, %s131_s8  ;;  %v16_v3 = vld [vmem:[#allocation0] sm:$0x3]  }
   0xc   :  { %v28_v4 = vld [vmem:[#allocation0] sm:$0x3]  }
   0xd   :  { %v34_v5 = vld [vmem:[#allocation0] sm:$0x3]  }
   0xe   :  { %17 = vrot.lane.b32.xlu0 %v16_v3, %s132_s9  ;;  %v40_v6 = vld [vmem:[#allocation0] sm:$0x3]  }
   0xf   :  { %29 = vrot.lane.b32.xlu1 %v28_v4, %s133_s10  ;;  %v46_v7 = vld [vmem:[#allocation0] sm:$0x3]  }
  0x10   :  { %v52_v8 = vld [vmem:[#allocation0] sm:$0x3]  }
  0x11   :  { %v58_v9 = vld [vmem:[#allocation0] sm:$0x3]  }
  0x12   :  { %35 = vrot.lane.b32.xlu0 %v34_v5, %s134_s11  ;;  %v64_v10 = vld [vmem:[#allocation0] sm:$0x3]  }
  0x13   :  { %41 = vrot.lane.b32.xlu1 %v40_v6, %s135_s12  ;;  %v7_v11 = vld [vmem:[#allocation0] sm:$0x3]  }
  0x14   :  { %9 = vst.msk [vmem:[%s223_s1] ss:$16 sm:$0x3] %vm8_vm0, %v7_v11   ;;  %v70_v12 = vld [vmem:[#allocation0] sm:$0x3]  }
  0x15   :  { %v76_v13 = vld [vmem:[#allocation0] sm:$0x3]  }
  0x16   :  { %47 = vrot.lane.b32.xlu0 %v46_v7, %s136_s13  ;;  %v82_v14 = vld [vmem:[#allocation0] sm:$0x3]  }
  0x17   :  { %53 = vrot.lane.b32.xlu1 %v52_v8, %s137_s14  ;;  %v88_v15 = vld [vmem:[#allocation0] sm:$0x3]  }
  0x18   :  { %v94_v16 = vld [vmem:[#allocation0] sm:$0x3]  }
  0x1a   :  { %59 = vrot.lane.b32.xlu0 %v58_v9, %s138_s17 }
  0x1b   :  { %65 = vrot.lane.b32.xlu1 %v64_v10, %s139_s18 }
  0x1e   :  { %71 = vrot.lane.b32.xlu0 %v70_v12, %s140_s19 }
  0x1f   :  { %77 = vrot.lane.b32.xlu1 %v76_v13, %s141_s20 }
  0x22   :  { %83 = vrot.lane.b32.xlu0 %v82_v14, %s142_s21 }
  0x23   :  { %89 = vrot.lane.b32.xlu1 %v88_v15, %s143_s22 }
  0x26   :  { %95 = vrot.lane.b32.xlu0 %v94_v16, %s144_s23 }
  0x7c   :  { %v12_v17 = vpop.permute.xlu0 %11  }
  0x7d   :  { %v24_v18 = vpop.permute.xlu1 %23   ;;  %100 = vst.msk [vmem:[%s223_s1 + $0x1] ss:$16 sm:$0x3] %vm8_vm0, %v12_v17  }
  0x7e   :  { %102 = vst.msk [vmem:[%s223_s1 + $0x3] ss:$16 sm:$0x3] %vm8_vm0, %v24_v18  }
  0x80   :  { %v18_v19 = vpop.permute.xlu0 %17  }
  0x81   :  { %v30_v20 = vpop.permute.xlu1 %29   ;;  %101 = vst.msk [vmem:[%s223_s1 + $0x2] ss:$16 sm:$0x3] %vm8_vm0, %v18_v19  }
  0x82   :  { %103 = vst.msk [vmem:[%s223_s1 + $0x4] ss:$16 sm:$0x3] %vm8_vm0, %v30_v20  }
  0x84   :  { %v36_v21 = vpop.permute.xlu0 %35  }
  0x85   :  { %v42_v22 = vpop.permute.xlu1 %41   ;;  %104 = vst.msk [vmem:[%s223_s1 + $0x5] ss:$16 sm:$0x3] %vm8_vm0, %v36_v21  }
  0x86   :  { %105 = vst.msk [vmem:[%s223_s1 + $0x6] ss:$16 sm:$0x3] %vm8_vm0, %v42_v22  }
  0x88   :  { %v48_v23 = vpop.permute.xlu0 %47  }
  0x89   :  { %v54_v24 = vpop.permute.xlu1 %53   ;;  %106 = vst.msk [vmem:[%s223_s1 + $0x7] ss:$16 sm:$0x3] %vm8_vm0, %v48_v23  }
  0x8a   :  { %107 = vst.msk [vmem:[%s223_s1 + $0x8] ss:$16 sm:$0x3] %vm8_vm0, %v54_v24  }
  0x8c   :  { %v60_v25 = vpop.permute.xlu0 %59  }
  0x8d   :  { %v66_v26 = vpop.permute.xlu1 %65   ;;  %108 = vst.msk [vmem:[%s223_s1 + $0x9] ss:$16 sm:$0x3] %vm8_vm0, %v60_v25  }
  0x8e   :  { %109 = vst.msk [vmem:[%s223_s1 + $0xa] ss:$16 sm:$0x3] %vm8_vm0, %v66_v26  }
  0x90   :  { %v72_v27 = vpop.permute.xlu0 %71  }
  0x91   :  { %v78_v28 = vpop.permute.xlu1 %77   ;;  %110 = vst.msk [vmem:[%s223_s1 + $0xb] ss:$16 sm:$0x3] %vm8_vm0, %v72_v27  }
  0x92   :  { %111 = vst.msk [vmem:[%s223_s1 + $0xc] ss:$16 sm:$0x3] %vm8_vm0, %v78_v28  }
  0x94   :  { %v84_v29 = vpop.permute.xlu0 %83  }
  0x95   :  { %v90_v30 = vpop.permute.xlu1 %89   ;;  %112 = vst.msk [vmem:[%s223_s1 + $0xd] ss:$16 sm:$0x3] %vm8_vm0, %v84_v29  }
  0x96   :  { %113 = vst.msk [vmem:[%s223_s1 + $0xe] ss:$16 sm:$0x3] %vm8_vm0, %v90_v30  }
  0x98   :  { %v96_v31 = vpop.permute.xlu0 %95  }
  0x99   :  { %114 = vst.msk [vmem:[%s223_s1 + $0xf] ss:$16 sm:$0x3] %vm8_vm0, %v96_v31  }

// kernel: vae_decoder_forward.1
= control target key start
LH: loop header
LB: loop body
LE: loop exit
PB: predicated region body
PF: predicated region fallthrough
CT: control target
= control target key end

     0   :  { %v101_v31 = vlaneseq  ;;  %vm384_vm6 = vcmask 130048   ;;  %vm927_vm11 = vcmask 261120   ;;  %s2709_s1 = inlined_call_operand.vmem [shape: f32[384,128], index: 1, kind: input, shape index: {}]   ;;  %s2710_s0 = inlined_call_operand.vmem [shape: f32[16,128], index: 0, kind: input, shape index: {}]   ;;  %s2711_s5 = inlined_call_operand.vmem [shape: f32[32,16], index: 5, kind: input, shape index: {}]   ;;  %s2712_s6 = inlined_call_operand.vmem [shape: f32[32,1], index: 6, kind: input, shape index: {}]   ;;  %s2713_s7 = inlined_call_operand.vmem [shape: f32[384,128], index: 7, kind: input, shape index: {}]   ;;  %s2714_s12 = inlined_call_operand.vmem [shape: f32[64,1], index: 12, kind: input, shape index: {}]   ;;  %s2715_s2 = inlined_call_operand.vmem [shape: f32[1,128], index: 2, kind: input, shape index: {}]   ;;  %s2716_s3 = inlined_call_operand.vmem [shape: f32[1,128], index: 3, kind: input, shape index: {}]   ;;  %s2717_s4 = inlined_call_operand.vmem [shape: f32[1,128], index: 4, kind: input, shape index: {}]   ;;  %s2718_s11 = inlined_call_operand.vmem [shape: f32[64,32], index: 11, kind: input, shape index: {}]   ;;  %s2719_s13 = inlined_call_operand.vmem [shape: f32[384,128], index: 13, kind: input, shape index: {}]   ;;  %s2720_s8 = inlined_call_operand.vmem [shape: f32[1,128], index: 8, kind: input, shape index: {}]   ;;  %s2721_s9 = inlined_call_operand.vmem [shape: f32[1,128], index: 9, kind: input, shape index: {}]   ;;  %s2722_s10 = inlined_call_operand.vmem [shape: f32[1,128], index: 10, kind: input, shape index: {}]   ;;  %s2723_s14 = inlined_call_operand.vmem [shape: f32[1,128], index: 14, kind: input, shape index: {}]   ;;  %s2724_s15 = inlined_call_operand.vmem [shape: f32[64,128], index: 15, kind: output, shape index: {}]  }
   0x1   :  { %v83_v0 = vld [vmem:[%s2709_s1 + $0xf8] sm:$0xff]  ;;  %v82_v2 = vld [vmem:[%s2709_s1 + $0xf0] sm:$0xff]  ;;  %v81_v5 = vld [vmem:[%s2709_s1 + $0xe8] sm:$0xff] }
   0x2   :  { %v67_v1 = vld [vmem:[%s2709_s1 + $0x78] sm:$0xff]  ;;  %1593 = vmatprep.subr.mxu0 %v83_v0  ;;  %v66_v3 = vld [vmem:[%s2709_s1 + $0x70] sm:$0xff]  ;;  %v65_v7 = vld [vmem:[%s2709_s1 + $0x68] sm:$0xff]  ;;  %v2160_v39 = vshrl.u32 %v101_v31, 7  ;;  %v1965_v0 = vmov 0  }
   0x3   :  { %v99_v4 = vld [vmem:[%s2709_s1 + $0x178] sm:$0xff]  ;;  %1594 = vmatpush3.msra.mxu0 %v67_v1  ;;  %v98_v6 = vld [vmem:[%s2709_s1 + $0x170] sm:$0xff]  ;;  %v97_v8 = vld [vmem:[%s2709_s1 + $0x168] sm:$0xff]  ;;  %1959 = vset.pattern.permute.xlu0 %v1965_v0 }
   0x4   :  { %1811 = vmatprep.subr.mxu1 %v99_v4  ;;  %1595 = vmatprep.subr.mxu0 %v82_v2  ;;  %v80_v9 = vld [vmem:[%s2709_s1 + $0xe0] sm:$0xff]  ;;  %v79_v12 = vld [vmem:[%s2709_s1 + $0xd8] sm:$0xff]  ;;  %v78_v15 = vld [vmem:[%s2709_s1 + $0xd0] sm:$0xff]  ;;  %v2181_v46 = vadd.s32 8, %v2160_v39  ;;  %v108_v50 = vand.u32 7, %v2160_v39  ;;  %vm132_vm0 = vcmp.lt.s32.totalorder %v2160_v39, 1 }
   0x5   :  { %1812 = vmatpush3.msra.mxu1 %v99_v4  ;;  %1596 = vmatpush3.msra.mxu0 %v66_v3  ;;  %v64_v10 = vld [vmem:[%s2709_s1 + $0x60] sm:$0xff]  ;;  %v63_v13 = vld [vmem:[%s2709_s1 + $0x58] sm:$0xff]  ;;  %v62_v16 = vld [vmem:[%s2709_s1 + $0x50] sm:$0xff]  ;;  %vm145_vm1 = vcmp.lt.s32.totalorder %v2160_v39, 7 }
   0x6   :  { %1813 = vmatprep.subr.mxu1 %v98_v6  ;;  %1597 = vmatprep.subr.mxu0 %v81_v5  ;;  %v96_v11 = vld [vmem:[%s2709_s1 + $0x160] sm:$0xff]  ;;  %v95_v14 = vld [vmem:[%s2709_s1 + $0x158] sm:$0xff]  ;;  %v94_v17 = vld [vmem:[%s2709_s1 + $0x150] sm:$0xff]  ;;  %v115_v57 = vand.u32 7, %v2181_v46  ;;  %vm1581_vm2 = vcmp.ne.s32.totalorder %v108_v50, 0  ;;  %vm1583_vm3 = vcmp.ne.s32.totalorder %v108_v50, 7 }
   0x7   :  { %1814 = vmatpush3.msra.mxu1 %v98_v6  ;;  %1598 = vmatpush3.msra.mxu0 %v65_v7  ;;  %v77_v18 = vld [vmem:[%s2709_s1 + $0xc8] sm:$0xff]  ;;  %v76_v21 = vld [vmem:[%s2709_s1 + $0xc0] sm:$0xff]  ;;  %v75_v24 = vld [vmem:[%s2709_s1 + $0xb8] sm:$0xff] }
   0x8   :  { %1815 = vmatprep.subr.mxu1 %v97_v8  ;;  %1599 = vmatprep.subr.mxu0 %v80_v9  ;;  %v61_v19 = vld [vmem:[%s2709_s1 + $0x48] sm:$0xff]  ;;  %v60_v22 = vld [vmem:[%s2709_s1 + $0x40] sm:$0xff]  ;;  %v59_v25 = vld [vmem:[%s2709_s1 + $0x38] sm:$0xff]  ;;  %vm1584_vm4 = vcmp.ne.s32.totalorder %v115_v57, 7  ;;  %vm1582_vm5 = vcmp.ne.s32.totalorder %v115_v57, 0 }
   0x9   :  { %1816 = vmatpush3.msra.mxu1 %v97_v8  ;;  %1600 = vmatpush3.msra.mxu0 %v64_v10  ;;  %v93_v20 = vld [vmem:[%s2709_s1 + $0x148] sm:$0xff]  ;;  %v92_v23 = vld [vmem:[%s2709_s1 + $0x140] sm:$0xff]  ;;  %v91_v26 = vld [vmem:[%s2709_s1 + $0x138] sm:$0xff] }
   0xa   :  { %1817 = vmatprep.subr.mxu1 %v96_v11  ;;  %1601 = vmatprep.subr.mxu0 %v79_v12  ;;  %v74_v27 = vld [vmem:[%s2709_s1 + $0xb0] sm:$0xff]  ;;  %v73_v30 = vld [vmem:[%s2709_s1 + $0xa8] sm:$0xff]  ;;  %v72_v34 = vld [vmem:[%s2709_s1 + $0xa0] sm:$0xff] }
   0xb   :  { %1818 = vmatpush3.msra.mxu1 %v96_v11  ;;  %1602 = vmatpush3.msra.mxu0 %v63_v13  ;;  %v58_v28 = vld [vmem:[%s2709_s1 + $0x30] sm:$0xff]  ;;  %v57_v32 = vld [vmem:[%s2709_s1 + $0x28] sm:$0xff]  ;;  %v56_v35 = vld [vmem:[%s2709_s1 + $0x20] sm:$0xff] }
   0xc   :  { %1819 = vmatprep.subr.mxu1 %v95_v14  ;;  %1603 = vmatprep.subr.mxu0 %v78_v15  ;;  %v90_v29 = vld [vmem:[%s2709_s1 + $0x130] sm:$0xff]  ;;  %v89_v33 = vld [vmem:[%s2709_s1 + $0x128] sm:$0xff]  ;;  %v88_v36 = vld [vmem:[%s2709_s1 + $0x120] sm:$0xff] }
   0xd   :  { %1820 = vmatpush3.msra.mxu1 %v95_v14  ;;  %1604 = vmatpush3.msra.mxu0 %v62_v16  ;;  %v71_v37 = vld [vmem:[%s2709_s1 + $0x98] sm:$0xff]  ;;  %v50_v41 = vld [vmem:[%s2710_s0] sm:$0xff]  ;;  %v51_v42 = vld [vmem:[%s2710_s0 + $0x8] sm:$0xff] }
   0xe   :  { %1821 = vmatprep.subr.mxu1 %v94_v17  ;;  %1605 = vmatprep.subr.mxu0 %v77_v18  ;;  %v55_v38 = vld [vmem:[%s2709_s1 + $0x18] sm:$0xff]  ;;  %v70_v43 = vld [vmem:[%s2709_s1 + $0x90] sm:$0xff]  ;;  %v69_v47 = vld [vmem:[%s2709_s1 + $0x88] sm:$0xff]  ;;  %v130_v48 = vrot.slane %v50_v41, 7  ;;  %v131_v49 = vrot.slane %v51_v42, 7  ;;  %v143_v53 = vrot.slane %v50_v41, 1 }
   0xf   :  { %1822 = vmatpush3.msra.mxu1 %v94_v17  ;;  %1606 = vmatpush3.msra.mxu0 %v61_v19  ;;  %v87_v40 = vld [vmem:[%s2709_s1 + $0x118] sm:$0xff]  ;;  %v54_v44 = vld [vmem:[%s2709_s1 + $0x10] sm:$0xff]  ;;  %v53_v51 = vld [vmem:[%s2709_s1 + $0x8] sm:$0xff]  ;;  %v144_v55 = vrot.slane %v51_v42, 1 }
  0x10   :  { %1823 = vmatprep.subr.mxu1 %v93_v20  ;;  %1607 = vmatprep.subr.mxu0 %v76_v21  ;;  %v86_v45 = vld [vmem:[%s2709_s1 + $0x110] sm:$0xff]  ;;  %v68_v52 = vld [vmem:[%s2709_s1 + $0x80] sm:$0xff]  ;;  %v85_v54 = vld [vmem:[%s2709_s1 + $0x108] sm:$0xff]  ;;  %v134_v58 = vsel %vm132_vm0, %v131_v49, %v130_v48  ;;  %v133_v62 = vsel %vm132_vm0, %v130_v48, %v131_v49 }
  0x11   :  { %1824 = vmatpush3.msra.mxu1 %v93_v20  ;;  %1608 = vmatpush3.msra.mxu0 %v60_v22  ;;  %v52_v56 = vld [vmem:[%s2709_s1] sm:$0xff]  ;;  %v146_v60 = vsel %vm145_vm1, %v143_v53, %v144_v55  ;;  %v147_v61 = vsel %vm145_vm1, %v144_v55, %v143_v53  ;;  %v361_v2 = vld [vmem:[%s2712_s6 + $0x8] sm:$0xff]  ;;  %v363_v3 = vld [vmem:[%s2712_s6 + $0x18] sm:$0xff] }
  0x12   :  { %1825 = vmatprep.subr.mxu1 %v92_v23  ;;  %1609 = vmatprep.subr.mxu0 %v75_v24  ;;  %v84_v59 = vld [vmem:[%s2709_s1 + $0x100] sm:$0xff]  ;;  %v362_v4 = vld [vmem:[%s2712_s6 + $0x10] sm:$0xff]  ;;  %v517_v5 = vld [vmem:[%s2713_s7 + $0xf8] sm:$0xff] }
  0x13   :  { %1826 = vmatpush3.msra.mxu1 %v92_v23  ;;  %1610 = vmatpush3.msra.mxu0 %v59_v25  ;;  %v356_v63 = vld [vmem:[%s2711_s5] sm:$0xff]  ;;  %v501_v6 = vld [vmem:[%s2713_s7 + $0x78] sm:$0xff]  ;;  %v516_v7 = vld [vmem:[%s2713_s7 + $0xf0] sm:$0xff] }
  0x14   :  { %1827 = vmatprep.subr.mxu1 %v91_v26  ;;  %1611 = vmatprep.subr.mxu0 %v74_v27  ;;  %v360_v1 = vld [vmem:[%s2712_s6] sm:$0xff]  ;;  %v886_v9 = vld [vmem:[%s2714_s12 + $0x38] sm:$0xff]  ;;  %v500_v10 = vld [vmem:[%s2713_s7 + $0x70] sm:$0xff] }
  0x15   :  { %1828 = vmatpush3.msra.mxu1 %v91_v26  ;;  %1612 = vmatpush3.msra.mxu0 %v58_v28  ;;  %v879_v8 = vld [vmem:[%s2714_s12] sm:$0xff]  ;;  %v515_v11 = vld [vmem:[%s2713_s7 + $0xe8] sm:$0xff]  ;;  %v881_v14 = vld [vmem:[%s2714_s12 + $0x10] sm:$0xff] }
  0x16   :  { %1829 = vmatprep.subr.mxu1 %v90_v29  ;;  %1613 = vmatprep.subr.mxu0 %v73_v30  ;;  %v499_v12 = vld [vmem:[%s2713_s7 + $0x68] sm:$0xff]  ;;  %v514_v15 = vld [vmem:[%s2713_s7 + $0xe0] sm:$0xff]  ;;  %v513_v17 = vld [vmem:[%s2713_s7 + $0xd8] sm:$0xff] }
  0x17   :  { %1830 = vmatpush3.msra.mxu1 %v90_v29  ;;  %1614 = vmatpush3.msra.mxu0 %v57_v32  ;;  %v880_v13 = vld [vmem:[%s2714_s12 + $0x8] sm:$0xff]  ;;  %v498_v16 = vld [vmem:[%s2713_s7 + $0x60] sm:$0xff]  ;;  %v882_v18 = vld [vmem:[%s2714_s12 + $0x18] sm:$0xff] }
  0x18   :  { %1831 = vmatprep.subr.mxu1 %v89_v33  ;;  %1615 = vmatprep.subr.mxu0 %v72_v34  ;;  %v883_v19 = vld [vmem:[%s2714_s12 + $0x20] sm:$0xff]  ;;  %v497_v20 = vld [vmem:[%s2713_s7 + $0x58] sm:$0xff]  ;;  %v512_v21 = vld [vmem:[%s2713_s7 + $0xd0] sm:$0xff] }
  0x19   :  { %1832 = vmatpush3.msra.mxu1 %v89_v33  ;;  %1616 = vmatpush3.msra.mxu0 %v56_v35  ;;  %v496_v22 = vld [vmem:[%s2713_s7 + $0x50] sm:$0xff]  ;;  %v884_v23 = vld [vmem:[%s2714_s12 + $0x28] sm:$0xff]  ;;  %v510_v27 = vld [vmem:[%s2713_s7 + $0xc0] sm:$0xff] }
  0x1a   :  { %1833 = vmatprep.subr.mxu1 %v88_v36  ;;  %1617 = vmatprep.subr.mxu0 %v71_v37  ;;  %v885_v24 = vld [vmem:[%s2714_s12 + $0x30] sm:$0xff]  ;;  %v511_v25 = vld [vmem:[%s2713_s7 + $0xc8] sm:$0xff]  ;;  %v494_v28 = vld [vmem:[%s2713_s7 + $0x40] sm:$0xff] }
  0x1b   :  { %1834 = vmatpush3.msra.mxu1 %v88_v36  ;;  %1618 = vmatpush3.msra.mxu0 %v55_v38  ;;  %v495_v26 = vld [vmem:[%s2713_s7 + $0x48] sm:$0xff]  ;;  %v509_v29 = vld [vmem:[%s2713_s7 + $0xb8] sm:$0xff]  ;;  %v508_v31 = vld [vmem:[%s2713_s7 + $0xb0] sm:$0xff] }
  0x1c   :  { %1835 = vmatprep.subr.mxu1 %v87_v40  ;;  %1619 = vmatprep.subr.mxu0 %v70_v43  ;;  %v493_v30 = vld [vmem:[%s2713_s7 + $0x38] sm:$0xff]  ;;  %v492_v32 = vld [vmem:[%s2713_s7 + $0x30] sm:$0xff]  ;;  %v1538_v35 = vld [vmem:[%s2715_s2] ss:$0 sm:$0xff] }
  0x1d   :  { %1836 = vmatpush3.msra.mxu1 %v87_v40  ;;  %1620 = vmatpush3.msra.mxu0 %v54_v44 }
  0x1e   :  { %1837 = vmatprep.subr.mxu1 %v86_v45  ;;  %1621 = vmatprep.subr.mxu0 %v69_v47 }
  0x1f   :  { %224 = vmatprep.mubr.f32.mxu0 %v50_v41  ;;  %1622 = vmatpush3.msra.mxu0 %v53_v51 }
  0x20   :  { %1838 = vmatpush3.msra.mxu1 %v86_v45  ;;  %1623 = vmatprep.subr.mxu0 %v68_v52 }
  0x21   :  { %1839 = vmatprep.subr.mxu1 %v85_v54  ;;  %1624 = vmatpush3.msra.mxu0 %v52_v56 }
  0x22   :  { %1840 = vmatpush3.msra.mxu1 %v85_v54  ;;  %1540 = vmatmul.mubr.msk.f32.vlgmr.msra.gmra.mxu0 %vm1581_vm2, %v134_v58 }
  0x23   :  { %1841 = vmatprep.subr.mxu1 %v84_v59  ;;  %229 = vmatprep.mubr.f32.mxu0 %v51_v42 }
  0x24   :  { %1842 = vmatpush3.msra.mxu1 %v84_v59  ;;  %1843 = vmatprep.mubr.msk.f32.mxu1 %vm1583_vm3, %v146_v60 }
  0x25   :  { %1844 = vmatmul.mubr.msk.f32.vlgmr.msra.gmra.mxu1 %vm1584_vm4, %v147_v61  ;;  %1960 = vset.pattern.permute.xlu1 %v1965_v0 }
  0x26   :  { %1542 = vmatmul.mubr.msk.f32.gmra.mxu0 %vm1582_vm5, %v133_v62  ;;  %1850 = vmatprep.mubr.msk.f32.mxu1 %vm384_vm6, %v356_v63 }
  0x27   :  { %366 = vperm.xlu0 %1959, %v360_v1   ;;  %371 = vperm.xlu1 %1960, %v361_v2  }
  0x28   :  { %1655 = vmatprep.subr.mxu0 %v517_v5 }
  0x29   :  { %1656 = vmatpush3.msra.mxu0 %v501_v6 }
  0x2a   :  { %1657 = vmatprep.subr.mxu0 %v516_v7 }
  0x2b   :  { %381 = vperm.xlu0 %1959, %v363_v3   ;;  %376 = vperm.xlu1 %1960, %v362_v4  }
  0x2c   :  { %1658 = vmatpush3.msra.mxu0 %v500_v10 }
  0x2d   :  { %1659 = vmatprep.subr.mxu0 %v515_v11  ;;  %v1548_v11 = vld [vmem:[%s2717_s4] ss:$0 sm:$0xff] }
  0x2e   :  { %1660 = vmatpush3.msra.mxu0 %v499_v12 }
  0x2f   :  { %889 = vperm.xlu0 %1959, %v879_v8   ;;  %924 = vperm.xlu1 %1960, %v886_v9   ;;  %v1547_v8 = vld [vmem:[%s2716_s3] ss:$0 sm:$0xff] }
  0x30   :  { %1661 = vmatprep.subr.mxu0 %v514_v15 }
  0x31   :  { %1662 = vmatpush3.msra.mxu0 %v498_v16 }
  0x32   :  { %1663 = vmatprep.subr.mxu0 %v513_v17 }
  0x33   :  { %894 = vperm.xlu0 %1959, %v880_v13   ;;  %899 = vperm.xlu1 %1960, %v881_v14  }
  0x34   :  { %1664 = vmatpush3.msra.mxu0 %v497_v20  ;;  %v358_v20 = vld [vmem:[%s2711_s5 + $0x10] sm:$0xff] }
  0x35   :  { %1665 = vmatprep.subr.mxu0 %v512_v21  ;;  %v532_v21 = vld [vmem:[%s2713_s7 + $0x170] sm:$0xff] }
  0x36   :  { %1666 = vmatpush3.msra.mxu0 %v496_v22  ;;  %v359_v22 = vld [vmem:[%s2711_s5 + $0x18] sm:$0xff] }
  0x37   :  { %904 = vperm.xlu0 %1959, %v882_v18   ;;  %909 = vperm.xlu1 %1960, %v883_v19   ;;  %v357_v18 = vld [vmem:[%s2711_s5 + $0x8] sm:$0xff]  ;;  %v533_v19 = vld [vmem:[%s2713_s7 + $0x178] sm:$0xff] }
  0x38   :  { %1667 = vmatprep.subr.mxu0 %v511_v25  ;;  %v529_v25 = vld [vmem:[%s2713_s7 + $0x158] sm:$0xff] }
  0x39   :  { %1668 = vmatpush3.msra.mxu0 %v495_v26  ;;  %v528_v26 = vld [vmem:[%s2713_s7 + $0x150] sm:$0xff] }
  0x3a   :  { %1669 = vmatprep.subr.mxu0 %v510_v27  ;;  %v527_v27 = vld [vmem:[%s2713_s7 + $0x148] sm:$0xff] }
  0x3b   :  { %914 = vperm.xlu0 %1959, %v884_v23   ;;  %919 = vperm.xlu1 %1960, %v885_v24   ;;  %v531_v23 = vld [vmem:[%s2713_s7 + $0x168] sm:$0xff]  ;;  %v530_v24 = vld [vmem:[%s2713_s7 + $0x160] sm:$0xff] }
  0x3c   :  { %1670 = vmatpush3.msra.mxu0 %v494_v28  ;;  %v526_v28 = vld [vmem:[%s2713_s7 + $0x140] sm:$0xff] }
  0x3d   :  { %1671 = vmatprep.subr.mxu0 %v509_v29  ;;  %v525_v29 = vld [vmem:[%s2713_s7 + $0x138] sm:$0xff] }
  0x3e   :  { %1672 = vmatpush3.msra.mxu0 %v493_v30  ;;  %v507_v30 = vld [vmem:[%s2713_s7 + $0xa8] sm:$0xff] }
  0x3f   :  { %1673 = vmatprep.subr.mxu0 %v508_v31  ;;  %v524_v31 = vld [vmem:[%s2713_s7 + $0x130] sm:$0xff] }
  0x40   :  { %1674 = vmatpush3.msra.mxu0 %v492_v32  ;;  %v491_v32 = vld [vmem:[%s2713_s7 + $0x28] sm:$0xff] }
  0x41   :  { %1675 = vmatprep.subr.mxu0 %v507_v30  ;;  %v1078_v30 = vld [vmem:[%s2719_s13 + $0x68] sm:$0xff] }
  0x42   :  { %1676 = vmatpush3.msra.mxu0 %v491_v32  ;;  %v1077_v32 = vld [vmem:[%s2719_s13 + $0x60] sm:$0xff] }
  0xe2   :  { %v1625_v33 = vpop.f32.mrf.mxu0 }
  0xe4   :  { %v1626_v34 = vpop.f32.mrf.mxu0 }
  0xe5   :  { %v1627_v36 = vadd.f32 %v1626_v34, %v1625_v33  ;;  %v1845_v37 = vpop.f32.mrf.mxu1  ;;  %v506_v33 = vld [vmem:[%s2713_s7 + $0xa0] sm:$0xff]  ;;  %v523_v34 = vld [vmem:[%s2713_s7 + $0x128] sm:$0xff] }
  0xe6   :  { %v1628_v38 = vpop.f32.mrf.mxu0  ;;  %1677 = vmatprep.subr.mxu0 %v506_v33  ;;  %v1092_v33 = vld [vmem:[%s2719_s13 + $0xd8] sm:$0xff] }
  0xe7   :  { %v227_v40 = vadd.f32 %v1627_v36, %v1538_v35  ;;  %v301_v42 = vpop.f32.mrf.mxu1  ;;  %v505_v36 = vld [vmem:[%s2713_s7 + $0x98] sm:$0xff] }
  0xe8   :  { %v1629_v41 = vpop.f32.mrf.mxu0 }
  0xe9   :  { %v1630_v43 = vadd.f32 %v1629_v41, %v1628_v38  ;;  %v302_v45 = vadd.f32 %v301_v42, %v227_v40  ;;  %v489_v38 = vld [vmem:[%s2713_s7 + $0x18] sm:$0xff]  ;;  %v504_v40 = vld [vmem:[%s2713_s7 + $0x90] sm:$0xff] }
  0xea   :  { %v521_v41 = vld [vmem:[%s2713_s7 + $0x118] sm:$0xff]  ;;  %v488_v42 = vld [vmem:[%s2713_s7 + $0x10] sm:$0xff] }
  0xeb   :  { %v232_v44 = vadd.f32 %v1630_v43, %v1538_v35  ;;  %v318_v49 = vmul.f32 %v302_v45, %v302_v45  ;;  %v490_v35 = vld [vmem:[%s2713_s7 + $0x20] sm:$0xff]  ;;  %v503_v43 = vld [vmem:[%s2713_s7 + $0x88] sm:$0xff] }
  0xec   :  { %1678 = vmatpush3.msra.mxu0 %v490_v35  ;;  %v1091_v35 = vld [vmem:[%s2719_s13 + $0xd0] sm:$0xff] }
  0xed   :  { %v307_v47 = vadd.f32 %v1845_v37, %v232_v44  ;;  %v522_v37 = vld [vmem:[%s2713_s7 + $0x120] sm:$0xff]  ;;  %1679 = vmatprep.subr.mxu0 %v505_v36  ;;  %v520_v44 = vld [vmem:[%s2713_s7 + $0x110] sm:$0xff] }
  0xee   :  { %1680 = vmatpush3.msra.mxu0 %v489_v38  ;;  %v1075_v36 = vld [vmem:[%s2719_s13 + $0x50] sm:$0xff] }
  0xef   :  { %v310_v48 = vadd.f32 %v307_v47, %v302_v45  ;;  %v319_v50 = vmul.f32 %v307_v47, %v307_v47  ;;  %1681 = vmatprep.subr.mxu0 %v504_v40 }
  0xf0   :  { %1682 = vmatpush3.msra.mxu0 %v488_v42 }
  0xf1   :  { %v311_v51 = vrot.slane %v310_v48, 4  ;;  %v320_v52 = vadd.f32 %v319_v50, %v318_v49  ;;  %1683 = vmatprep.subr.mxu0 %v503_v43  ;;  %v486_v49 = vld [vmem:[%s2713_s7] sm:$0xff] }
  0xf2   :  { %v518_v50 = vld [vmem:[%s2713_s7 + $0x100] sm:$0xff] }
  0xf3   :  { %v312_v53 = vadd.f32 %v311_v51, %v310_v48  ;;  %v321_v54 = vrot.slane %v320_v52, 4  ;;  %v519_v48 = vld [vmem:[%s2713_s7 + $0x108] sm:$0xff]  ;;  %v367_v51 = vpop.permute.xlu0 %366  ;;  %v1553_v43 = vld [vmem:[%s2720_s8] ss:$0 sm:$0xff] }
  0xf5   :  { %v313_v55 = vrot.slane %v312_v53, 2  ;;  %v322_v56 = vadd.f32 %v321_v54, %v320_v52  ;;  %v372_v52 = vpop.permute.xlu1 %371 }
  0xf7   :  { %v314_v57 = vadd.f32 %v313_v55, %v312_v53  ;;  %v323_v58 = vrot.slane %v322_v56, 2 }
  0xf9   :  { %v315_v59 = vrot.slane %v314_v57, 1  ;;  %v324_v60 = vadd.f32 %v323_v58, %v322_v56  ;;  %v382_v58 = vpop.permute.xlu0 %381 }
  0xfb   :  { %v316_v61 = vadd.f32 %v315_v59, %v314_v57  ;;  %v325_v62 = vrot.slane %v324_v60, 1 }
  0xfd   :  { %v317_v63 = vmul.f32 0.0625, %v316_v61  ;;  %v326_v0 = vadd.f32 %v325_v62, %v324_v60  ;;  %v541_v60 = vand.u32 15, %v2160_v39 }
  0xff   :  { %v327_v1 = vmul.f32 0.0625, %v326_v0  ;;  %v328_v2 = vmul.f32 %v317_v63, %v317_v63  ;;  %v330_v5 = vsub.f32 %v302_v45, %v317_v63  ;;  %v331_v6 = vsub.f32 %v307_v47, %v317_v63  ;;  %v487_v45 = vld [vmem:[%s2713_s7 + $0x8] sm:$0xff]  ;;  %v502_v47 = vld [vmem:[%s2713_s7 + $0x80] sm:$0xff]  ;;  %v377_v63 = vpop.permute.xlu1 %376 }
 0x100   :  { %1684 = vmatpush3.msra.mxu0 %v487_v45  ;;  %vm1585_vm7 = vcmp.ne.s32.totalorder %v541_v60, 0 }
 0x101   :  { %v329_v3 = vsub.f32 %v327_v1, %v328_v2  ;;  %1685 = vmatprep.subr.mxu0 %v502_v47  ;;  %v548_v1 = vand.u32 15, %v2181_v46  ;;  %v2421_v2 = vadd.s32 24, %v2160_v39 }
 0x102   :  { %1686 = vmatpush3.msra.mxu0 %v486_v49 }
 0x103   :  { %v332_v4 = vadd.f32 1e-05, %v329_v3  ;;  %vm1587_vm8 = vcmp.ne.s32.totalorder %v548_v1, 15 }
 0x105   :  { %1961 = vrsqrt.f32 %v332_v4 }
 0x112   :  { %v1962_v7 = vpop.eup %1961 }
 0x113   :  { %v334_v9 = vmul.f32 %v1962_v7, %v330_v5  ;;  %v335_v10 = vmul.f32 %v1962_v7, %v331_v6  ;;  %v535_v7 = vadd.s32 16, %v2160_v39 }
 0x115   :  { %v344_v12 = vmul.f32 %v1547_v8, %v335_v10  ;;  %v343_v13 = vmul.f32 %v1547_v8, %v334_v9 }
 0x117   :  { %v353_v14 = vadd.f32 %v1548_v11, %v344_v12  ;;  %v352_v15 = vadd.f32 %v1548_v11, %v343_v13 }
 0x119   :  { %v355_v16 = vmax.f32 %v353_v14, 0.0  ;;  %v354_v17 = vmax.f32 %v352_v15, 0.0  ;;  %v562_v14 = vand.u32 15, %v2421_v2 }
 0x11b   :  { %1846 = vmatprep.subr.mxu1 %v355_v16  ;;  %vm1588_vm9 = vcmp.ne.s32.totalorder %v562_v14, 15 }
 0x11c   :  { %1847 = vmatpush3.msra.mxu1 %v355_v16 }
 0x11d   :  { %1848 = vmatprep.subr.mxu1 %v354_v17 }
 0x11e   :  { %1849 = vmatpush3.msra.mxu1 %v354_v17 }
 0x11f   :  { %1851 = vmatmul.mubr.msk.f32.vlgmr.msra.gmra.mxu1 %vm384_vm6, %v357_v18  ;;  %1856 = vmatprep.subr.mxu1 %v533_v19  ;;  %v555_v18 = vand.u32 15, %v535_v7 }
 0x120   :  { %1853 = vmatprep.mubr.msk.f32.mxu1 %vm384_vm6, %v358_v20  ;;  %1857 = vmatpush3.msra.mxu1 %v533_v19 }
 0x121   :  { %1858 = vmatprep.subr.mxu1 %v532_v21  ;;  %vm1586_vm10 = vcmp.ne.s32.totalorder %v555_v18, 0 }
 0x122   :  { %1859 = vmatpush3.msra.mxu1 %v532_v21 }
 0x123   :  { %1854 = vmatmul.mubr.msk.f32.gmra.mxu1 %vm384_vm6, %v359_v22  ;;  %1860 = vmatprep.subr.mxu1 %v531_v23 }
 0x124   :  { %1861 = vmatpush3.msra.mxu1 %v531_v23 }
 0x125   :  { %1862 = vmatprep.subr.mxu1 %v530_v24 }
 0x126   :  { %1863 = vmatpush3.msra.mxu1 %v530_v24  ;;  %v871_v24 = vld [vmem:[%s2718_s11] sm:$0xff] }
 0x127   :  { %1864 = vmatprep.subr.mxu1 %v529_v25 }
 0x128   :  { %1865 = vmatpush3.msra.mxu1 %v529_v25  ;;  %v1096_v25 = vld [vmem:[%s2719_s13 + $0xf8] sm:$0xff] }
 0x129   :  { %1866 = vmatprep.subr.mxu1 %v528_v26  ;;  %1731 = vmatprep.subr.mxu0 %v1096_v25 }
 0x12a   :  { %1867 = vmatpush3.msra.mxu1 %v528_v26  ;;  %v1080_v26 = vld [vmem:[%s2719_s13 + $0x78] sm:$0xff] }
 0x12b   :  { %1868 = vmatprep.subr.mxu1 %v527_v27 }
 0x12c   :  { %1869 = vmatpush3.msra.mxu1 %v527_v27  ;;  %v1095_v27 = vld [vmem:[%s2719_s13 + $0xf0] sm:$0xff] }
 0x12d   :  { %1870 = vmatprep.subr.mxu1 %v526_v28 }
 0x12e   :  { %1871 = vmatpush3.msra.mxu1 %v526_v28  ;;  %v1079_v28 = vld [vmem:[%s2719_s13 + $0x70] sm:$0xff] }
 0x12f   :  { %1872 = vmatprep.subr.mxu1 %v525_v29 }
 0x130   :  { %1873 = vmatpush3.msra.mxu1 %v525_v29  ;;  %v1094_v29 = vld [vmem:[%s2719_s13 + $0xe8] sm:$0xff] }
 0x131   :  { %1874 = vmatprep.subr.mxu1 %v524_v31 }
 0x132   :  { %1875 = vmatpush3.msra.mxu1 %v524_v31  ;;  %v1093_v31 = vld [vmem:[%s2719_s13 + $0xe0] sm:$0xff] }
 0x133   :  { %1876 = vmatprep.subr.mxu1 %v523_v34 }
 0x134   :  { %1877 = vmatpush3.msra.mxu1 %v523_v34  ;;  %v1076_v34 = vld [vmem:[%s2719_s13 + $0x58] sm:$0xff] }
 0x135   :  { %1878 = vmatprep.subr.mxu1 %v522_v37 }
 0x136   :  { %1879 = vmatpush3.msra.mxu1 %v522_v37 }
 0x137   :  { %1880 = vmatprep.subr.mxu1 %v521_v41 }
 0x138   :  { %1881 = vmatpush3.msra.mxu1 %v521_v41 }
 0x139   :  { %1882 = vmatprep.subr.mxu1 %v520_v44 }
 0x13a   :  { %1883 = vmatpush3.msra.mxu1 %v520_v44 }
 0x13b   :  { %1884 = vmatprep.subr.mxu1 %v519_v48 }
 0x13c   :  { %1885 = vmatpush3.msra.mxu1 %v519_v48 }
 0x13d   :  { %1886 = vmatprep.subr.mxu1 %v518_v50 }
 0x13e   :  { %1887 = vmatpush3.msra.mxu1 %v518_v50 }
 0x1df   :  { %v1852_v53 = vpop.f32.mrf.mxu1 }
 0x1e0   :  { %v469_v54 = vadd.f32 %v1852_v53, %v372_v52 }
 0x1e1   :  { %v463_v55 = vpop.f32.mrf.mxu1 }
 0x1e2   :  { %v483_v56 = vmax.f32 %v469_v54, 0.0  ;;  %v464_v57 = vadd.f32 %v463_v55, %v367_v51 }
 0x1e3   :  { %v1855_v59 = vpop.f32.mrf.mxu1 }
 0x1e4   :  { %v482_v61 = vmax.f32 %v464_v57, 0.0  ;;  %v479_v62 = vadd.f32 %v1855_v59, %v382_v58  ;;  %v614_v3 = vrot.slane %v483_v56, 1  ;;  %v590_v15 = vrot.slane %v483_v56, 7 }
 0x1e5   :  { %v473_v0 = vpop.f32.mrf.mxu1 }
 0x1e6   :  { %v613_v4 = vrot.slane %v482_v61, 1  ;;  %v485_v5 = vmax.f32 %v479_v62, 0.0  ;;  %v474_v6 = vadd.f32 %v473_v0, %v377_v63  ;;  %703 = vmatprep.mubr.f32.mxu0 %v482_v61  ;;  %v589_v8 = vrot.slane %v482_v61, 7 }
 0x1e8   :  { %v592_v9 = vrot.slane %v485_v5, 7  ;;  %v484_v10 = vmax.f32 %v474_v6, 0.0  ;;  %v619_v11 = vsel %vm145_vm1, %v613_v4, %v614_v3  ;;  %v616_v46 = vrot.slane %v485_v5, 1 }
 0x1e9   :  { %1888 = vmatprep.mubr.f32.mxu1 %v619_v11  ;;  %v595_v20 = vsel %vm132_vm0, %v589_v8, %v590_v15 }
 0x1ea   :  { %v615_v12 = vrot.slane %v484_v10, 1  ;;  %v596_v13 = vsel %vm132_vm0, %v592_v9, %v589_v8  ;;  %v591_v19 = vrot.slane %v484_v10, 7  ;;  %v620_v21 = vsel %vm145_vm1, %v616_v46, %v613_v4 }
 0x1eb   :  { %1555 = vmatmul.mubr.msk.f32.vlgmr.msra.gmra.mxu0 %vm1585_vm7, %v596_v13 }
 0x1ec   :  { %708 = vmatprep.mubr.f32.mxu0 %v483_v56  ;;  %v618_v16 = vsel %vm145_vm1, %v614_v3, %v615_v12  ;;  %v617_v17 = vsel %vm145_vm1, %v615_v12, %v616_v46  ;;  %v594_v22 = vsel %vm132_vm0, %v590_v15, %v591_v19  ;;  %v593_v23 = vsel %vm132_vm0, %v591_v19, %v592_v9 }
 0x1ed   :  { %1889 = vmatmul.mubr.msk.f32.vlgmr.msra.gmra.mxu1 %vm1587_vm8, %v618_v16  ;;  %1732 = vmatpush3.msra.mxu0 %v1080_v26 }
 0x1ee   :  { %1891 = vmatprep.mubr.f32.mxu1 %v617_v17  ;;  %1733 = vmatprep.subr.mxu0 %v1095_v27 }
 0x1ef   :  { %709 = vmatmul.mubr.f32.gmra.mxu0 %v595_v20 }
 0x1f0   :  { %713 = vmatprep.mubr.f32.mxu0 %v484_v10  ;;  %1734 = vmatpush3.msra.mxu0 %v1079_v28 }
 0x1f1   :  { %1892 = vmatmul.mubr.msk.f32.gmra.mxu1 %vm1588_vm9, %v620_v21  ;;  %1735 = vmatprep.subr.mxu0 %v1094_v29 }
 0x1f2   :  { %1902 = vmatprep.mubr.msk.f32.mxu1 %vm927_vm11, %v871_v24  ;;  %1736 = vmatpush3.msra.mxu0 %v1078_v30 }
 0x1f3   :  { %1557 = vmatmul.mubr.msk.f32.gmra.mxu0 %vm1586_vm10, %v594_v22  ;;  %1737 = vmatprep.subr.mxu0 %v1093_v31 }
 0x1f4   :  { %718 = vmatprep.mubr.f32.mxu0 %v485_v5  ;;  %1738 = vmatpush3.msra.mxu0 %v1077_v32  ;;  %v1562_v32 = vld [vmem:[%s2721_s9] ss:$0 sm:$0xff] }
 0x1f5   :  { %1739 = vmatprep.subr.mxu0 %v1092_v33 }
 0x1f6   :  { %1740 = vmatpush3.msra.mxu0 %v1076_v34 }
 0x1f7   :  { %719 = vmatmul.mubr.f32.gmra.mxu0 %v593_v23  ;;  %1741 = vmatprep.subr.mxu0 %v1091_v35 }
 0x1f8   :  { %1742 = vmatpush3.msra.mxu0 %v1075_v36 }
 0x2ab   :  { %v1687_v37 = vpop.f32.mrf.mxu0 }
 0x2ad   :  { %v1688_v38 = vpop.f32.mrf.mxu0  ;;  %v1890_v40 = vpop.f32.mrf.mxu1 }
 0x2ae   :  { %v1689_v42 = vadd.f32 %v1688_v38, %v1687_v37  ;;  %v1563_v37 = vld [vmem:[%s2722_s10] ss:$0 sm:$0xff] }
 0x2af   :  { %v1690_v41 = vpop.f32.mrf.mxu0  ;;  %v790_v44 = vpop.f32.mrf.mxu1 }
 0x2b0   :  { %v706_v49 = vadd.f32 %v1689_v42, %v1553_v43 }
 0x2b1   :  { %v1691_v45 = vpop.f32.mrf.mxu0  ;;  %v1893_v51 = vpop.f32.mrf.mxu1 }
 0x2b2   :  { %v1692_v47 = vadd.f32 %v1691_v45, %v1690_v41  ;;  %v791_v56 = vadd.f32 %v790_v44, %v706_v49 }
 0x2b3   :  { %v1693_v48 = vpop.f32.mrf.mxu0  ;;  %v800_v58 = vpop.f32.mrf.mxu1 }
 0x2b4   :  { %v711_v50 = vadd.f32 %v1692_v47, %v1553_v43  ;;  %v819_v63 = vmul.f32 %v791_v56, %v791_v56 }
 0x2b5   :  { %v1694_v52 = vpop.f32.mrf.mxu0 }
 0x2b6   :  { %v796_v53 = vadd.f32 %v1890_v40, %v711_v50  ;;  %v1695_v54 = vadd.f32 %v1694_v52, %v1693_v48  ;;  %v872_v52 = vld [vmem:[%s2718_s11 + $0x8] sm:$0xff] }
 0x2b7   :  { %v1696_v55 = vpop.f32.mrf.mxu0 }
 0x2b8   :  { %v716_v57 = vadd.f32 %v1695_v54, %v1553_v43  ;;  %v820_v60 = vmul.f32 %v796_v53, %v796_v53  ;;  %v809_v0 = vadd.f32 %v796_v53, %v791_v56  ;;  %v873_v54 = vld [vmem:[%s2718_s11 + $0x10] sm:$0xff] }
 0x2b9   :  { %v1697_v59 = vpop.f32.mrf.mxu0 }
 0x2ba   :  { %v801_v61 = vadd.f32 %v800_v58, %v716_v57  ;;  %v1698_v62 = vadd.f32 %v1697_v59, %v1696_v55  ;;  %v823_v4 = vadd.f32 %v820_v60, %v819_v63  ;;  %v1111_v55 = vld [vmem:[%s2719_s13 + $0x170] sm:$0xff]  ;;  %v1110_v57 = vld [vmem:[%s2719_s13 + $0x168] sm:$0xff]  ;;  %v875_v58 = vld [vmem:[%s2718_s11 + $0x20] sm:$0xff] }
 0x2bb   :  { %v1109_v59 = vld [vmem:[%s2719_s13 + $0x160] sm:$0xff]  ;;  %v876_v60 = vld [vmem:[%s2718_s11 + $0x28] sm:$0xff]  ;;  %v1107_v63 = vld [vmem:[%s2719_s13 + $0x150] sm:$0xff] }
 0x2bc   :  { %v821_v1 = vmul.f32 %v801_v61, %v801_v61  ;;  %v721_v3 = vadd.f32 %v1698_v62, %v1553_v43  ;;  %v810_v5 = vadd.f32 %v809_v0, %v801_v61  ;;  %v877_v62 = vld [vmem:[%s2718_s11 + $0x30] sm:$0xff]  ;;  %v878_v0 = vld [vmem:[%s2718_s11 + $0x38] sm:$0xff] }
 0x2be   :  { %v806_v6 = vadd.f32 %v1893_v51, %v721_v3  ;;  %v824_v7 = vadd.f32 %v823_v4, %v821_v1  ;;  %v1106_v1 = vld [vmem:[%s2719_s13 + $0x148] sm:$0xff]  ;;  %v1105_v3 = vld [vmem:[%s2719_s13 + $0x140] sm:$0xff]  ;;  %v1104_v4 = vld [vmem:[%s2719_s13 + $0x138] sm:$0xff] }
 0x2c0   :  { %v811_v8 = vadd.f32 %v810_v5, %v806_v6  ;;  %v822_v9 = vmul.f32 %v806_v6, %v806_v6  ;;  %v1090_v5 = vld [vmem:[%s2719_s13 + $0xc8] sm:$0xff] }
 0x2c1   :  { %1743 = vmatprep.subr.mxu0 %v1090_v5 }
 0x2c2   :  { %v812_v10 = vrot.slane %v811_v8, 4  ;;  %v825_v11 = vadd.f32 %v824_v7, %v822_v9  ;;  %v1074_v7 = vld [vmem:[%s2719_s13 + $0x48] sm:$0xff] }
 0x2c3   :  { %1744 = vmatpush3.msra.mxu0 %v1074_v7  ;;  %v1102_v9 = vld [vmem:[%s2719_s13 + $0x128] sm:$0xff] }
 0x2c4   :  { %v813_v46 = vadd.f32 %v812_v10, %v811_v8  ;;  %v826_v12 = vrot.slane %v825_v11, 4  ;;  %v1089_v8 = vld [vmem:[%s2719_s13 + $0xc0] sm:$0xff] }
 0x2c5   :  { %1745 = vmatprep.subr.mxu0 %v1089_v8  ;;  %v1073_v10 = vld [vmem:[%s2719_s13 + $0x40] sm:$0xff] }
 0x2c6   :  { %v814_v13 = vrot.slane %v813_v46, 2  ;;  %v827_v14 = vadd.f32 %v826_v12, %v825_v11  ;;  %1746 = vmatpush3.msra.mxu0 %v1073_v10  ;;  %v1088_v11 = vld [vmem:[%s2719_s13 + $0xb8] sm:$0xff] }
 0x2c7   :  { %1747 = vmatprep.subr.mxu0 %v1088_v11  ;;  %v1072_v12 = vld [vmem:[%s2719_s13 + $0x38] sm:$0xff] }
 0x2c8   :  { %v815_v15 = vadd.f32 %v814_v13, %v813_v46  ;;  %v828_v16 = vrot.slane %v827_v14, 2  ;;  %v1101_v46 = vld [vmem:[%s2719_s13 + $0x120] sm:$0xff]  ;;  %1748 = vmatpush3.msra.mxu0 %v1072_v12  ;;  %v1087_v13 = vld [vmem:[%s2719_s13 + $0xb0] sm:$0xff] }
 0x2c9   :  { %1749 = vmatprep.subr.mxu0 %v1087_v13 }
 0x2ca   :  { %v816_v17 = vrot.slane %v815_v15, 1  ;;  %v829_v18 = vadd.f32 %v828_v16, %v827_v14  ;;  %v1100_v14 = vld [vmem:[%s2719_s13 + $0x118] sm:$0xff]  ;;  %v1086_v16 = vld [vmem:[%s2719_s13 + $0xa8] sm:$0xff] }
 0x2cc   :  { %v817_v19 = vadd.f32 %v816_v17, %v815_v15  ;;  %v830_v20 = vrot.slane %v829_v18, 1  ;;  %v1071_v15 = vld [vmem:[%s2719_s13 + $0x30] sm:$0xff] }
 0x2cd   :  { %1750 = vmatpush3.msra.mxu0 %v1071_v15  ;;  %v1099_v17 = vld [vmem:[%s2719_s13 + $0x110] sm:$0xff] }
 0x2ce   :  { %v818_v21 = vmul.f32 0.03125, %v817_v19  ;;  %v831_v22 = vadd.f32 %v830_v20, %v829_v18  ;;  %1751 = vmatprep.subr.mxu0 %v1086_v16  ;;  %v1070_v18 = vld [vmem:[%s2719_s13 + $0x28] sm:$0xff]  ;;  %v1085_v19 = vld [vmem:[%s2719_s13 + $0xa0] sm:$0xff] }
 0x2cf   :  { %1752 = vmatpush3.msra.mxu0 %v1070_v18  ;;  %v1098_v20 = vld [vmem:[%s2719_s13 + $0x108] sm:$0xff] }
 0x2d0   :  { %v832_v23 = vmul.f32 0.03125, %v831_v22  ;;  %v833_v24 = vmul.f32 %v818_v21, %v818_v21  ;;  %v838_v27 = vsub.f32 %v806_v6, %v818_v21  ;;  %v837_v28 = vsub.f32 %v801_v61, %v818_v21  ;;  %v1108_v61 = vld [vmem:[%s2719_s13 + $0x158] sm:$0xff]  ;;  %v1103_v6 = vld [vmem:[%s2719_s13 + $0x130] sm:$0xff]  ;;  %1753 = vmatprep.subr.mxu0 %v1085_v19 }
 0x2d1   :  { %v836_v29 = vsub.f32 %v796_v53, %v818_v21  ;;  %v835_v30 = vsub.f32 %v791_v56, %v818_v21  ;;  %v1112_v53 = vld [vmem:[%s2719_s13 + $0x178] sm:$0xff]  ;;  %v1069_v21 = vld [vmem:[%s2719_s13 + $0x20] sm:$0xff] }
 0x2d2   :  { %v834_v25 = vsub.f32 %v832_v23, %v833_v24  ;;  %v874_v56 = vld [vmem:[%s2718_s11 + $0x18] sm:$0xff]  ;;  %1754 = vmatpush3.msra.mxu0 %v1069_v21  ;;  %v1097_v23 = vld [vmem:[%s2719_s13 + $0x100] sm:$0xff] }
 0x2d3   :  { %v1084_v22 = vld [vmem:[%s2719_s13 + $0x98] sm:$0xff] }
 0x2d4   :  { %v839_v26 = vadd.f32 1e-05, %v834_v25  ;;  %1755 = vmatprep.subr.mxu0 %v1084_v22  ;;  %v1068_v24 = vld [vmem:[%s2719_s13 + $0x18] sm:$0xff]  ;;  %v1083_v25 = vld [vmem:[%s2719_s13 + $0x90] sm:$0xff] }
 0x2d5   :  { %1756 = vmatpush3.msra.mxu0 %v1068_v24 }
 0x2d6   :  { %1963 = vrsqrt.f32 %v839_v26  ;;  %1757 = vmatprep.subr.mxu0 %v1083_v25  ;;  %v1067_v26 = vld [vmem:[%s2719_s13 + $0x10] sm:$0xff]  ;;  %v1114_v25 = vadd.s32 32, %v2160_v39 }
 0x2d7   :  { %1758 = vmatpush3.msra.mxu0 %v1067_v26 }
 0x2e3   :  { %v1964_v31 = vpop.eup %1963 }
 0x2e4   :  { %v844_v33 = vmul.f32 %v1964_v31, %v838_v27  ;;  %v843_v34 = vmul.f32 %v1964_v31, %v837_v28  ;;  %v842_v35 = vmul.f32 %v1964_v31, %v836_v29  ;;  %v841_v36 = vmul.f32 %v1964_v31, %v835_v30  ;;  %v1082_v27 = vld [vmem:[%s2719_s13 + $0x88] sm:$0xff]  ;;  %v1081_v29 = vld [vmem:[%s2719_s13 + $0x80] sm:$0xff]  ;;  %v890_v31 = vpop.permute.xlu0 %889 }
 0x2e5   :  { %1759 = vmatprep.subr.mxu0 %v1082_v27  ;;  %v1066_v28 = vld [vmem:[%s2719_s13 + $0x8] sm:$0xff]  ;;  %v1065_v30 = vld [vmem:[%s2719_s13] sm:$0xff] }
 0x2e6   :  { %v855_v38 = vmul.f32 %v1562_v32, %v844_v33  ;;  %v854_v40 = vmul.f32 %v1562_v32, %v843_v34  ;;  %v853_v41 = vmul.f32 %v1562_v32, %v842_v35  ;;  %v852_v44 = vmul.f32 %v1562_v32, %v841_v36  ;;  %1760 = vmatpush3.msra.mxu0 %v1066_v28  ;;  %v925_v33 = vpop.permute.xlu1 %924 }
 0x2e7   :  { %1761 = vmatprep.subr.mxu0 %v1081_v29  ;;  %v1150_v29 = vand.u32 31, %v1114_v25 }
 0x2e8   :  { %v866_v42 = vadd.f32 %v1563_v37, %v855_v38  ;;  %v865_v43 = vadd.f32 %v1563_v37, %v854_v40  ;;  %v864_v47 = vadd.f32 %v1563_v37, %v853_v41  ;;  %v863_v49 = vadd.f32 %v1563_v37, %v852_v44  ;;  %1762 = vmatpush3.msra.mxu0 %v1065_v30  ;;  %v895_v32 = vpop.permute.xlu0 %894 }
 0x2e9   :  { %vm1590_vm15 = vcmp.ne.s32.totalorder %v1150_v29, 0 }
 0x2ea   :  { %v870_v45 = vmax.f32 %v866_v42, 0.0  ;;  %v869_v48 = vmax.f32 %v865_v43, 0.0  ;;  %v868_v50 = vmax.f32 %v864_v47, 0.0  ;;  %v867_v51 = vmax.f32 %v863_v49, 0.0  ;;  %v900_v37 = vpop.permute.xlu1 %899 }
 0x2ec   :  { %1894 = vmatprep.subr.mxu1 %v870_v45  ;;  %v905_v35 = vpop.permute.xlu0 %904 }
 0x2ed   :  { %1895 = vmatpush3.msra.mxu1 %v870_v45 }
 0x2ee   :  { %1896 = vmatprep.subr.mxu1 %v869_v48 }
 0x2ef   :  { %1897 = vmatpush3.msra.mxu1 %v869_v48 }
 0x2f0   :  { %1898 = vmatprep.subr.mxu1 %v868_v50  ;;  %v915_v47 = vpop.permute.xlu0 %914 }
 0x2f1   :  { %1899 = vmatpush3.msra.mxu1 %v868_v50  ;;  %v910_v50 = vpop.permute.xlu1 %909 }
 0x2f2   :  { %1900 = vmatprep.subr.mxu1 %v867_v51 }
 0x2f3   :  { %1901 = vmatpush3.msra.mxu1 %v867_v51 }
 0x2f4   :  { %1903 = vmatmul.mubr.msk.f32.vlgmr.msra.gmra.mxu1 %vm927_vm11, %v872_v52  ;;  %1914 = vmatprep.subr.mxu1 %v1112_v53 }
 0x2f5   :  { %1905 = vmatprep.mubr.msk.f32.mxu1 %vm927_vm11, %v873_v54  ;;  %1915 = vmatpush3.msra.mxu1 %v1112_v53 }
 0x2f6   :  { %1916 = vmatprep.subr.mxu1 %v1111_v55 }
 0x2f7   :  { %1917 = vmatpush3.msra.mxu1 %v1111_v55 }
 0x2f8   :  { %1906 = vmatmul.mubr.msk.f32.gmra.mxu1 %vm927_vm11, %v874_v56  ;;  %1918 = vmatprep.subr.mxu1 %v1110_v57 }
 0x2f9   :  { %1908 = vmatprep.mubr.msk.f32.mxu1 %vm927_vm11, %v875_v58  ;;  %1919 = vmatpush3.msra.mxu1 %v1110_v57 }
 0x2fa   :  { %1920 = vmatprep.subr.mxu1 %v1109_v59 }
 0x2fb   :  { %1921 = vmatpush3.msra.mxu1 %v1109_v59 }
 0x2fc   :  { %1909 = vmatmul.mubr.msk.f32.gmra.mxu1 %vm927_vm11, %v876_v60  ;;  %1922 = vmatprep.subr.mxu1 %v1108_v61 }
 0x2fd   :  { %1911 = vmatprep.mubr.msk.f32.mxu1 %vm927_vm11, %v877_v62  ;;  %1923 = vmatpush3.msra.mxu1 %v1108_v61 }
 0x2fe   :  { %1924 = vmatprep.subr.mxu1 %v1107_v63 }
 0x2ff   :  { %1925 = vmatpush3.msra.mxu1 %v1107_v63  ;;  %v1143_v63 = vand.u32 31, %v2421_v2  ;;  %v1117_v2 = vadd.s32 56, %v2160_v39 }
 0x300   :  { %1912 = vmatmul.mubr.msk.f32.gmra.mxu1 %vm927_vm11, %v878_v0  ;;  %1926 = vmatprep.subr.mxu1 %v1106_v1  ;;  %v1122_v0 = vand.u32 31, %v2160_v39 }
 0x301   :  { %1927 = vmatpush3.msra.mxu1 %v1106_v1  ;;  %vm1591_vm12 = vcmp.ne.s32.totalorder %v1143_v63, 31  ;;  %v1171_v19 = vand.u32 31, %v1117_v2 }
 0x302   :  { %1928 = vmatprep.subr.mxu1 %v1105_v3  ;;  %vm1589_vm13 = vcmp.ne.s32.totalorder %v1122_v0, 0 }
 0x303   :  { %1929 = vmatpush3.msra.mxu1 %v1105_v3  ;;  %vm1592_vm14 = vcmp.ne.s32.totalorder %v1171_v19, 31 }
 0x304   :  { %1930 = vmatprep.subr.mxu1 %v1104_v4 }
 0x305   :  { %1931 = vmatpush3.msra.mxu1 %v1104_v4  ;;  %v920_v4 = vpop.permute.xlu1 %919 }
 0x306   :  { %1932 = vmatprep.subr.mxu1 %v1103_v6 }
 0x307   :  { %1933 = vmatpush3.msra.mxu1 %v1103_v6 }
 0x308   :  { %1934 = vmatprep.subr.mxu1 %v1102_v9 }
 0x309   :  { %1935 = vmatpush3.msra.mxu1 %v1102_v9 }
 0x30a   :  { %1936 = vmatprep.subr.mxu1 %v1101_v46 }
 0x30b   :  { %1937 = vmatpush3.msra.mxu1 %v1101_v46 }
 0x30c   :  { %1938 = vmatprep.subr.mxu1 %v1100_v14 }
 0x30d   :  { %1939 = vmatpush3.msra.mxu1 %v1100_v14 }
 0x30e   :  { %1940 = vmatprep.subr.mxu1 %v1099_v17 }
 0x30f   :  { %1941 = vmatpush3.msra.mxu1 %v1099_v17 }
 0x310   :  { %1942 = vmatprep.subr.mxu1 %v1098_v20 }
 0x311   :  { %1943 = vmatpush3.msra.mxu1 %v1098_v20 }
 0x312   :  { %1944 = vmatprep.subr.mxu1 %v1097_v23 }
 0x313   :  { %1945 = vmatpush3.msra.mxu1 %v1097_v23 }
 0x3b4   :  { %v1904_v34 = vpop.f32.mrf.mxu1 }
 0x3b5   :  { %v1024_v36 = vadd.f32 %v1904_v34, %v895_v32 }
 0x3b6   :  { %v1018_v38 = vpop.f32.mrf.mxu1 }
 0x3b7   :  { %v1019_v40 = vadd.f32 %v1018_v38, %v890_v31  ;;  %v2626_v41 = vmax.f32 %v1024_v36, 0.0 }
 0x3b8   :  { %v1907_v42 = vpop.f32.mrf.mxu1 }
 0x3b9   :  { %v2628_v43 = vmax.f32 %v1019_v40, 0.0  ;;  %v1034_v44 = vadd.f32 %v1907_v42, %v905_v35  ;;  %v1271_v51 = vrot.slane %v2626_v41, 1  ;;  %v1223_v20 = vrot.slane %v2626_v41, 7 }
 0x3ba   :  { %v1028_v45 = vpop.f32.mrf.mxu1 }
 0x3bb   :  { %v1270_v48 = vrot.slane %v2628_v43, 1  ;;  %v1029_v49 = vadd.f32 %v1028_v45, %v900_v37  ;;  %1380 = vmatprep.mubr.f32.mxu0 %v2628_v43  ;;  %v2633_v52 = vmax.f32 %v1034_v44, 0.0  ;;  %v1222_v46 = vrot.slane %v2628_v43, 7 }
 0x3bc   :  { %v1910_v53 = vpop.f32.mrf.mxu1 }
 0x3bd   :  { %v1059_v54 = vmax.f32 %v1029_v49, 0.0  ;;  %v1044_v55 = vadd.f32 %v1910_v53, %v915_v47  ;;  %v1284_v57 = vsel %vm145_vm1, %v1270_v48, %v1271_v51  ;;  %v1273_v60 = vrot.slane %v2633_v52, 1 }
 0x3be   :  { %v1038_v56 = vpop.f32.mrf.mxu1  ;;  %1946 = vmatprep.mubr.f32.mxu1 %v1284_v57  ;;  %v1236_v24 = vsel %vm132_vm0, %v1222_v46, %v1223_v20  ;;  %v1225_v28 = vrot.slane %v2633_v52, 7 }
 0x3bf   :  { %v1272_v58 = vrot.slane %v1059_v54, 1  ;;  %v1039_v59 = vadd.f32 %v1038_v56, %v910_v50  ;;  %v2638_v61 = vmax.f32 %v1044_v55, 0.0  ;;  %v1224_v23 = vrot.slane %v1059_v54, 7 }
 0x3c0   :  { %v1913_v62 = vpop.f32.mrf.mxu1 }
 0x3c1   :  { %v1061_v1 = vmax.f32 %v1039_v59, 0.0  ;;  %v1054_v3 = vadd.f32 %v1913_v62, %v925_v33  ;;  %v1283_v6 = vsel %vm145_vm1, %v1271_v51, %v1272_v58  ;;  %v1282_v7 = vsel %vm145_vm1, %v1272_v58, %v1273_v60 }
 0x3c2   :  { %v1048_v5 = vpop.f32.mrf.mxu1  ;;  %1947 = vmatmul.mubr.f32.vlgmr.msra.gmra.mxu1 %v1283_v6  ;;  %v1275_v11 = vrot.slane %v2638_v61, 1  ;;  %v1235_v27 = vsel %vm132_vm0, %v1223_v20, %v1224_v23  ;;  %v1234_v31 = vsel %vm132_vm0, %v1224_v23, %v1225_v28  ;;  %v1227_v33 = vrot.slane %v2638_v61, 7 }
 0x3c3   :  { %v1274_v8 = vrot.slane %v1061_v1, 1  ;;  %v1064_v9 = vmax.f32 %v1054_v3, 0.0  ;;  %v1049_v10 = vadd.f32 %v1048_v5, %v920_v4  ;;  %1949 = vmatprep.mubr.f32.mxu1 %v1282_v7  ;;  %v1226_v30 = vrot.slane %v1061_v1, 7 }
 0x3c5   :  { %v1229_v12 = vrot.slane %v1064_v9, 7  ;;  %v1063_v13 = vmax.f32 %v1049_v10, 0.0  ;;  %v1281_v14 = vsel %vm145_vm1, %v1273_v60, %v1274_v8  ;;  %v1280_v15 = vsel %vm145_vm1, %v1274_v8, %v1275_v11 }
 0x3c6   :  { %v1277_v16 = vrot.slane %v1064_v9, 1  ;;  %1950 = vmatmul.mubr.msk.f32.gmra.mxu1 %vm1591_vm12, %v1281_v14  ;;  %v1233_v32 = vsel %vm132_vm0, %v1225_v28, %v1226_v30  ;;  %v1232_v35 = vsel %vm132_vm0, %v1226_v30, %v1227_v33 }
 0x3c7   :  { %v1276_v17 = vrot.slane %v1063_v13, 1  ;;  %v1237_v18 = vsel %vm132_vm0, %v1229_v12, %v1222_v46  ;;  %1952 = vmatprep.mubr.f32.mxu1 %v1280_v15  ;;  %v1228_v34 = vrot.slane %v1063_v13, 7 }
 0x3c8   :  { %1574 = vmatmul.mubr.msk.f32.vlgmr.msra.gmra.mxu0 %vm1589_vm13, %v1237_v18  ;;  %v1285_v26 = vsel %vm145_vm1, %v1277_v16, %v1270_v48 }
 0x3c9   :  { %1385 = vmatprep.mubr.f32.mxu0 %v2626_v41  ;;  %v1279_v21 = vsel %vm145_vm1, %v1275_v11, %v1276_v17  ;;  %v1278_v22 = vsel %vm145_vm1, %v1276_v17, %v1277_v16  ;;  %v1231_v36 = vsel %vm132_vm0, %v1227_v33, %v1228_v34  ;;  %v1230_v37 = vsel %vm132_vm0, %v1228_v34, %v1229_v12  ;;  %v1572_v41 = vld [vmem:[%s2723_s14] ss:$0 sm:$0xff] }
 0x3ca   :  { %1953 = vmatmul.mubr.f32.gmra.mxu1 %v1279_v21 }
 0x3cb   :  { %1955 = vmatprep.mubr.f32.mxu1 %v1278_v22 }
 0x3cc   :  { %1386 = vmatmul.mubr.f32.gmra.mxu0 %v1236_v24 }
 0x3cd   :  { %1390 = vmatprep.mubr.f32.mxu0 %v1059_v54 }
 0x3ce   :  { %1956 = vmatmul.mubr.msk.f32.gmra.mxu1 %vm1592_vm14, %v1285_v26 }
 0x3d0   :  { %1391 = vmatmul.mubr.f32.gmra.mxu0 %v1235_v27 }
 0x3d1   :  { %1395 = vmatprep.mubr.f32.mxu0 %v2633_v52 }
 0x3d4   :  { %1396 = vmatmul.mubr.f32.gmra.mxu0 %v1234_v31 }
 0x3d5   :  { %1400 = vmatprep.mubr.f32.mxu0 %v1061_v1 }
 0x3d8   :  { %1576 = vmatmul.mubr.msk.f32.gmra.mxu0 %vm1590_vm15, %v1233_v32 }
 0x3d9   :  { %1405 = vmatprep.mubr.f32.mxu0 %v2638_v61 }
 0x3dc   :  { %1406 = vmatmul.mubr.f32.gmra.mxu0 %v1232_v35 }
 0x3dd   :  { %1410 = vmatprep.mubr.f32.mxu0 %v1063_v13 }
 0x3e0   :  { %1411 = vmatmul.mubr.f32.gmra.mxu0 %v1231_v36 }
 0x3e1   :  { %1415 = vmatprep.mubr.f32.mxu0 %v1064_v9 }
 0x3e4   :  { %1416 = vmatmul.mubr.f32.gmra.mxu0 %v1230_v37 }
 0x482   :  { %v1948_v40 = vpop.f32.mrf.mxu1 }
 0x484   :  { %v1487_v47 = vpop.f32.mrf.mxu1 }
 0x486   :  { %v1951_v52 = vpop.f32.mrf.mxu1 }
 0x488   :  { %v1763_v38 = vpop.f32.mrf.mxu0  ;;  %v1497_v58 = vpop.f32.mrf.mxu1 }
 0x48a   :  { %v1764_v42 = vpop.f32.mrf.mxu0  ;;  %v1954_v0 = vpop.f32.mrf.mxu1 }
 0x48b   :  { %v1765_v43 = vadd.f32 %v1764_v42, %v1763_v38 }
 0x48c   :  { %v1766_v44 = vpop.f32.mrf.mxu0  ;;  %v1507_v7 = vpop.f32.mrf.mxu1 }
 0x48d   :  { %v1383_v45 = vadd.f32 %v1765_v43, %v1572_v41 }
 0x48e   :  { %v1767_v48 = vpop.f32.mrf.mxu0  ;;  %v1957_v46 = vpop.f32.mrf.mxu1 }
 0x48f   :  { %v1488_v49 = vadd.f32 %v1487_v47, %v1383_v45  ;;  %v1768_v50 = vadd.f32 %v1767_v48, %v1766_v44 }
 0x490   :  { %v1769_v51 = vpop.f32.mrf.mxu0  ;;  %v1517_v17 = vpop.f32.mrf.mxu1 }
 0x491   :  { %1526 = vst [vmem:[%s2724_s15] sm:$0xff] %v1488_v49  ;;  %v1388_v39 = vadd.f32 %v1768_v50, %v1572_v41 }
 0x492   :  { %v1770_v53 = vpop.f32.mrf.mxu0 }
 0x493   :  { %v1493_v54 = vadd.f32 %v1948_v40, %v1388_v39  ;;  %v1771_v55 = vadd.f32 %v1770_v53, %v1769_v51 }
 0x494   :  { %v1772_v56 = vpop.f32.mrf.mxu0 }
 0x495   :  { %1527 = vst [vmem:[%s2724_s15 + $0x8] sm:$0xff] %v1493_v54  ;;  %v1393_v57 = vadd.f32 %v1771_v55, %v1572_v41 }
 0x496   :  { %v1773_v59 = vpop.f32.mrf.mxu0 }
 0x497   :  { %v1498_v60 = vadd.f32 %v1497_v58, %v1393_v57  ;;  %v1774_v61 = vadd.f32 %v1773_v59, %v1772_v56 }
 0x498   :  { %v1775_v62 = vpop.f32.mrf.mxu0 }
 0x499   :  { %1528 = vst [vmem:[%s2724_s15 + $0x10] sm:$0xff] %v1498_v60  ;;  %v1398_v63 = vadd.f32 %v1774_v61, %v1572_v41 }
 0x49a   :  { %v1776_v1 = vpop.f32.mrf.mxu0 }
 0x49b   :  { %v1503_v3 = vadd.f32 %v1951_v52, %v1398_v63  ;;  %v1777_v4 = vadd.f32 %v1776_v1, %v1775_v62 }
 0x49c   :  { %v1778_v5 = vpop.f32.mrf.mxu0 }
 0x49d   :  { %1529 = vst [vmem:[%s2724_s15 + $0x18] sm:$0xff] %v1503_v3  ;;  %v1403_v6 = vadd.f32 %v1777_v4, %v1572_v41 }
 0x49e   :  { %v1779_v8 = vpop.f32.mrf.mxu0 }
 0x49f   :  { %v1508_v9 = vadd.f32 %v1507_v7, %v1403_v6  ;;  %v1780_v10 = vadd.f32 %v1779_v8, %v1778_v5 }
 0x4a0   :  { %v1781_v11 = vpop.f32.mrf.mxu0 }
 0x4a1   :  { %1530 = vst [vmem:[%s2724_s15 + $0x20] sm:$0xff] %v1508_v9  ;;  %v1408_v2 = vadd.f32 %v1780_v10, %v1572_v41 }
 0x4a2   :  { %v1782_v12 = vpop.f32.mrf.mxu0 }
 0x4a3   :  { %v1513_v13 = vadd.f32 %v1954_v0, %v1408_v2  ;;  %v1783_v14 = vadd.f32 %v1782_v12, %v1781_v11 }
 0x4a4   :  { %v1784_v15 = vpop.f32.mrf.mxu0 }
 0x4a5   :  { %1531 = vst [vmem:[%s2724_s15 + $0x28] sm:$0xff] %v1513_v13  ;;  %v1413_v16 = vadd.f32 %v1783_v14, %v1572_v41 }
 0x4a6   :  { %v1785_v18 = vpop.f32.mrf.mxu0 }
 0x4a7   :  { %v1518_v19 = vadd.f32 %v1517_v17, %v1413_v16  ;;  %v1786_v20 = vadd.f32 %v1785_v18, %v1784_v15 }
 0x4a9   :  { %1532 = vst [vmem:[%s2724_s15 + $0x30] sm:$0xff] %v1518_v19  ;;  %v1418_v21 = vadd.f32 %v1786_v20, %v1572_v41 }
 0x4ab   :  { %v1523_v22 = vadd.f32 %v1957_v46, %v1418_v21 }
 0x4ad   :  { %1533 = vst [vmem:[%s2724_s15 + $0x38] sm:$0xff] %v1523_v22 }

</bundles_post_ra>
